<compile_context>
chip_gen: v7x
topology: tpu7x:2x2x1
jax: 0.10.0
libtpu: 0.0.40
codegen_flags: <defaults>
</compile_context>

<pallas_src>
import functools

import numpy as np
import jax
import jax.numpy as jnp
from jax.experimental import pallas as pl
from jax.experimental.pallas import tpu as pltpu


# ----------------------------- fused cell kernel -----------------------------
def _agcrn_cell_kernel(x_ref, st_ref, s1_ref, s2_ref,
                       gwx_ref, gwh_ref, gb_ref,
                       uwx_ref, uwh_ref, ub_ref,
                       h_ref, *, cheb_k, mxu_dtype):
    bt, N, di = x_ref.shape
    do = st_ref.shape[-1]

    x3 = x_ref[...].astype(jnp.float32)            # (bt, N, di)
    st3 = st_ref[...].astype(jnp.float32)          # (bt, N, do)
    supports = (s1_ref[...].astype(mxu_dtype),     # (bt, N, N)
                s2_ref[...].astype(mxu_dtype))

    def smul(s, v):
        # (bt, N, N) @ (bt, N, c) on the MXU, f32 accumulation.
        return jnp.einsum('bnm,bmc->bnc', s, v.astype(mxu_dtype),
                          preferred_element_type=jnp.float32)

    def cheb_terms(v3):
        # Chebyshev terms applied directly to the features:
        #   T0 v = v (identity term: no matmul, no eye materialization)
        #   T1 v = s v
        #   Tk v = 2 s (T_{k-1} v) - T_{k-2} v
        # Order matches torch: [T0(s1) v .. T_{K-1}(s1) v, T0(s2) v .. T_{K-1}(s2) v]
        out = []
        for s in supports:
            terms = [v3, smul(s, v3)]
            for _ in range(2, cheb_k):
                terms.append(2.0 * smul(s, terms[-1]) - terms[-2])
            out.extend(terms)
        # flatten (bt, N, c) -> (bt*N, c) for the 2-D feature matmuls
        return [t.reshape(bt * N, t.shape[-1]) for t in out]

    def project(t_x, t_h, wx_ref, wh_ref, b_ref):
        # Equivalent to cat_j([T_j x, T_j h], -1) @ W + b, with W pre-split
        # into per-Chebyshev-block x/h slabs (x_g is never materialized).
        acc = None
        for j in range(2 * cheb_k):
            part = jnp.dot(t_x[j].astype(mxu_dtype), wx_ref[j],
                           preferred_element_type=jnp.float32)
            part = part + jnp.dot(t_h[j].astype(mxu_dtype), wh_ref[j],
                                  preferred_element_type=jnp.float32)
            acc = part if acc is None else acc + part
        return acc + b_ref[...]

    t_x = cheb_terms(x3)           # shared by gate and update branches
    t_st = cheb_terms(st3)

    # gate AGCN:  z_r = sigmoid(AGCN(cat(x, state), supports))
    z_r = jax.nn.sigmoid(project(t_x, t_st, gwx_ref, gwh_ref, gb_ref))   # (bt*N, 2*do)
    z = z_r[:, :do]
    r = z_r[:, do:]

    # update AGCN: hc = tanh(AGCN(cat(x, z*state), supports))
    st2 = st3.reshape(bt * N, do)
    t_zs = cheb_terms((z * st2).reshape(bt, N, do))
    hc = jnp.tanh(project(t_x, t_zs, uwx_ref, uwh_ref, ub_ref))          # (bt*N, do)

    h = r * st2 + (1.0 - r) * hc
    h_ref[...] = h.reshape(bt, N, do)


# --------------------------------- wrapper ------------------------------------
def agcrn_cell(x, state, supports, gate_w, gate_b, update_w, update_b,
               *, cheb_k=3, batch_tile=32, mxu_dtype=jnp.float32):
    """AGCRNCell.forward.  x: (B,N,dim_in), state: (B,N,dim_out),
    supports: list of TWO (B,N,N) adjacency tensors (weights' 2*cheb_k*dim_in
    row count implies exactly two supports, as in the PyTorch module)."""
    assert len(supports) == 2, "AGCRNCell weight shape implies exactly 2 supports"
    assert cheb_k >= 2
    B, N, di = x.shape
    do = state.shape[-1]
    C = di + do
    K2 = 2 * cheb_k
    assert gate_w.shape == (K2 * C, 2 * do) and gate_b.shape == (2 * do,)
    assert update_w.shape == (K2 * C, do) and update_b.shape == (do,)
    s1, s2 = supports

    f32 = jnp.float32

    def split_w(w):
        # (2K*C, out) -> x-slabs (2K, di, out) and h-slabs (2K, do, out),
        # matching torch's cat([T_j @ cat(x, h)], -1) row ordering.  Done in
        # plain XLA outside the kernel (free at trace time).
        w3 = w.astype(f32).reshape(K2, C, w.shape[-1])
        return w3[:, :di, :].astype(mxu_dtype), w3[:, di:, :].astype(mxu_dtype)

    gwx, gwh = split_w(gate_w)
    uwx, uwh = split_w(update_w)
    gb = gate_b.astype(f32).reshape(1, 2 * do)
    ub = update_b.astype(f32).reshape(1, do)

    bt = min(B, batch_tile)
    grid = (pl.cdiv(B, bt),)

    bmap = lambda i: (i, 0, 0)       # batch-tiled operands
    wmap3 = lambda i: (0, 0, 0)      # weights: same VMEM block every step
    wmap2 = lambda i: (0, 0)

    kern = functools.partial(_agcrn_cell_kernel, cheb_k=cheb_k, mxu_dtype=mxu_dtype)
    return pl.pallas_call(
        kern,
        out_shape=jax.ShapeDtypeStruct((B, N, do), f32),
        grid=grid,
        in_specs=[
            pl.BlockSpec((bt, N, di), bmap),              # x
            pl.BlockSpec((bt, N, do), bmap),              # state
            pl.BlockSpec((bt, N, N), bmap),               # support 1
            pl.BlockSpec((bt, N, N), bmap),               # support 2
            pl.BlockSpec((K2, di, 2 * do), wmap3),        # gate W (x slabs)
            pl.BlockSpec((K2, do, 2 * do), wmap3),        # gate W (h slabs)
            pl.BlockSpec((1, 2 * do), wmap2),             # gate bias
            pl.BlockSpec((K2, di, do), wmap3),            # update W (x slabs)
            pl.BlockSpec((K2, do, do), wmap3),            # update W (h slabs)
            pl.BlockSpec((1, do), wmap2),                 # update bias
        ],
        out_specs=pl.BlockSpec((bt, N, do), bmap),
        compiler_params=pltpu.CompilerParams(
            dimension_semantics=("parallel",)),
    )(x.astype(f32), state.astype(f32),
      s1.astype(mxu_dtype), s2.astype(mxu_dtype),
      gwx, gwh, gb, uwx, uwh, ub)


# ----------------------------- pure-JAX reference -----------------------------
def agcrn_cell_reference(x, state, supports, gate_w, gate_b, update_w, update_b,
                         cheb_k):
    hp = jax.lax.Precision.HIGHEST

    def agcn(v, w, b):
        B, N, _ = v.shape
        eye = jnp.broadcast_to(jnp.eye(N, dtype=v.dtype), (B, N, N))
        support_set = []
        for s in supports:
            ks = [eye, s]
            for _ in range(2, cheb_k):
                ks.append(jnp.einsum('bnm,bmc->bnc', 2.0 * s, ks[-1],
                                     precision=hp) - ks[-2])
            support_set.extend(ks)
        xg = jnp.concatenate(
            [jnp.einsum('bnm,bmc->bnc', sk, v, precision=hp) for sk in support_set],
            axis=-1)
        return jnp.einsum('bni,io->bno', xg, w, precision=hp) + b

    hidden = state.shape[-1]
    z_r = jax.nn.sigmoid(agcn(jnp.concatenate([x, state], -1), gate_w, gate_b))
    z, r = z_r[..., :hidden], z_r[..., hidden:]
    hc = jnp.tanh(agcn(jnp.concatenate([x, z * state], -1), update_w, update_b))
    return r * state + (1.0 - r) * hc


# ----------------------------------- driver -----------------------------------
if __name__ == "__main__":
    B, N = 2, 16
    DIM_IN, DIM_OUT, CHEB_K = 2, 32, 3

    key = jax.random.PRNGKey(0)
    ks = jax.random.split(key, 6)
    x = jax.random.normal(ks[0], (B, N, DIM_IN), jnp.float32)
    state = jax.random.normal(ks[1], (B, N, DIM_OUT), jnp.float32)
    # row-normalized random adjacencies (as produced by the DGGGL graph learner)
    s1 = jax.nn.softmax(jax.random.normal(ks[2], (B, N, N), jnp.float32), axis=-1)
    s2 = jax.nn.softmax(jax.random.normal(ks[3], (B, N, N), jnp.float32), axis=-1)

    C = DIM_IN + DIM_OUT
    std = 1.0 / np.sqrt(2 * CHEB_K * C)
    gate_w = std * jax.random.normal(ks[4], (2 * CHEB_K * C, 2 * DIM_OUT), jnp.float32)
    gate_b = jnp.zeros((2 * DIM_OUT,), jnp.float32)
    update_w = std * jax.random.normal(ks[5], (2 * CHEB_K * C, DIM_OUT), jnp.float32)
    update_b = jnp.zeros((DIM_OUT,), jnp.float32)

    fwd = jax.jit(functools.partial(agcrn_cell, cheb_k=CHEB_K))
    h = fwd(x, state, [s1, s2], gate_w, gate_b, update_w, update_b)
    h = jax.block_until_ready(h)
    assert h.shape == (B, N, DIM_OUT)

    ref = agcrn_cell_reference(x, state, [s1, s2], gate_w, gate_b,
                               update_w, update_b, CHEB_K)
    np.testing.assert_allclose(np.asarray(h), np.asarray(ref), rtol=3e-3, atol=3e-3)
    print("KERNEL_OK")
</pallas_src>

<mosaic_0001>
module attributes {stable_mosaic.version = 11 : i64} {
  func.func @_agcrn_cell_kernel(%arg0: i32, %arg1: memref<2x16x2xf32, #tpu.memory_space<vmem>>, %arg2: memref<2x16x32xf32, #tpu.memory_space<vmem>>, %arg3: memref<2x16x16xf32, #tpu.memory_space<vmem>>, %arg4: memref<2x16x16xf32, #tpu.memory_space<vmem>>, %arg5: memref<6x2x64xf32, #tpu.memory_space<vmem>>, %arg6: memref<6x32x64xf32, #tpu.memory_space<vmem>>, %arg7: memref<1x64xf32, #tpu.memory_space<vmem>>, %arg8: memref<6x2x32xf32, #tpu.memory_space<vmem>>, %arg9: memref<6x32x32xf32, #tpu.memory_space<vmem>>, %arg10: memref<1x32xf32, #tpu.memory_space<vmem>>, %arg11: memref<2x16x32xf32, #tpu.memory_space<vmem>>) attributes {dimension_semantics = [#tpu.dimension_semantics<parallel>], iteration_bounds = array<i64: 1>, scalar_prefetch = 0 : i64, scratch_operands = 0 : i64, tpu.core_type = #tpu.core_type<tc>, window_params = [{transform_indices = @transform_0, window_bounds = array<i64: 2, 16, 2>}, {transform_indices = @transform_1, window_bounds = array<i64: 2, 16, 32>}, {transform_indices = @transform_2, window_bounds = array<i64: 2, 16, 16>}, {transform_indices = @transform_3, window_bounds = array<i64: 2, 16, 16>}, {pipeline_mode = #tpu.pipeline_mode<synchronous>, transform_indices = @transform_4, window_bounds = array<i64: 6, 2, 64>}, {pipeline_mode = #tpu.pipeline_mode<synchronous>, transform_indices = @transform_5, window_bounds = array<i64: 6, 32, 64>}, {pipeline_mode = #tpu.pipeline_mode<synchronous>, transform_indices = @transform_6, window_bounds = array<i64: 1, 64>}, {pipeline_mode = #tpu.pipeline_mode<synchronous>, transform_indices = @transform_7, window_bounds = array<i64: 6, 2, 32>}, {pipeline_mode = #tpu.pipeline_mode<synchronous>, transform_indices = @transform_8, window_bounds = array<i64: 6, 32, 32>}, {pipeline_mode = #tpu.pipeline_mode<synchronous>, transform_indices = @transform_9, window_bounds = array<i64: 1, 32>}, {transform_indices = @transform_10, window_bounds = array<i64: 2, 16, 32>}]} {
    %c0 = arith.constant 0 : index
    %c0_0 = arith.constant 0 : index
    %c0_1 = arith.constant 0 : index
    %0 = vector.load %arg1[%c0, %c0_0, %c0_1] : memref<2x16x2xf32, #tpu.memory_space<vmem>>, vector<2x16x2xf32>
    %c0_2 = arith.constant 0 : index
    %c0_3 = arith.constant 0 : index
    %c0_4 = arith.constant 0 : index
    %1 = vector.load %arg2[%c0_2, %c0_3, %c0_4] : memref<2x16x32xf32, #tpu.memory_space<vmem>>, vector<2x16x32xf32>
    %c0_5 = arith.constant 0 : index
    %c0_6 = arith.constant 0 : index
    %c0_7 = arith.constant 0 : index
    %2 = vector.load %arg3[%c0_5, %c0_6, %c0_7] : memref<2x16x16xf32, #tpu.memory_space<vmem>>, vector<2x16x16xf32>
    %c0_8 = arith.constant 0 : index
    %c0_9 = arith.constant 0 : index
    %c0_10 = arith.constant 0 : index
    %3 = vector.load %arg4[%c0_8, %c0_9, %c0_10] : memref<2x16x16xf32, #tpu.memory_space<vmem>>, vector<2x16x16xf32>
    "tpu.trace_start"() <{level = 10 : i32, message = "bnm,bmc->bnc"}> : () -> ()
    %cst = arith.constant dense<0.000000e+00> : vector<2x16x2xf32>
    %4 = tpu.matmul %2, %0, %cst {dimension_numbers = #tpu.dot_dimension_numbers<[2], [1], [1], [2], [0, 0, 0, 1, 1, 2], [0], [0]>} : vector<2x16x16xf32>, vector<2x16x2xf32>, vector<2x16x2xf32> -> vector<2x16x2xf32>
    %cst_11 = arith.constant dense<0.000000e+00> : vector<2x16x2xf32>
    %5 = tpu.matmul %2, %4, %cst_11 {dimension_numbers = #tpu.dot_dimension_numbers<[2], [1], [1], [2], [0, 0, 0, 1, 1, 2], [0], [0]>} : vector<2x16x16xf32>, vector<2x16x2xf32>, vector<2x16x2xf32> -> vector<2x16x2xf32>
    "tpu.trace_stop"() : () -> ()
    %cst_12 = arith.constant 2.000000e+00 : f32
    %6 = vector.broadcast %cst_12 : f32 to vector<2x16x2xf32>
    %7 = arith.mulf %6, %5 : vector<2x16x2xf32>
    %8 = arith.subf %7, %0 : vector<2x16x2xf32>
    "tpu.trace_start"() <{level = 10 : i32, message = "bnm,bmc->bnc"}> : () -> ()
    %cst_13 = arith.constant dense<0.000000e+00> : vector<2x16x2xf32>
    %9 = tpu.matmul %3, %0, %cst_13 {dimension_numbers = #tpu.dot_dimension_numbers<[2], [1], [1], [2], [0, 0, 0, 1, 1, 2], [0], [0]>} : vector<2x16x16xf32>, vector<2x16x2xf32>, vector<2x16x2xf32> -> vector<2x16x2xf32>
    %cst_14 = arith.constant dense<0.000000e+00> : vector<2x16x2xf32>
    %10 = tpu.matmul %3, %9, %cst_14 {dimension_numbers = #tpu.dot_dimension_numbers<[2], [1], [1], [2], [0, 0, 0, 1, 1, 2], [0], [0]>} : vector<2x16x16xf32>, vector<2x16x2xf32>, vector<2x16x2xf32> -> vector<2x16x2xf32>
    "tpu.trace_stop"() : () -> ()
    %cst_15 = arith.constant 2.000000e+00 : f32
    %11 = vector.broadcast %cst_15 : f32 to vector<2x16x2xf32>
    %12 = arith.mulf %11, %10 : vector<2x16x2xf32>
    %13 = arith.subf %12, %0 : vector<2x16x2xf32>
    %14 = vector.shape_cast %0 : vector<2x16x2xf32> to vector<32x2xf32>
    %15 = vector.shape_cast %4 : vector<2x16x2xf32> to vector<32x2xf32>
    %16 = vector.shape_cast %8 : vector<2x16x2xf32> to vector<32x2xf32>
    %17 = vector.shape_cast %0 : vector<2x16x2xf32> to vector<32x2xf32>
    %18 = vector.shape_cast %9 : vector<2x16x2xf32> to vector<32x2xf32>
    %19 = vector.shape_cast %13 : vector<2x16x2xf32> to vector<32x2xf32>
    "tpu.trace_start"() <{level = 10 : i32, message = "bnm,bmc->bnc"}> : () -> ()
    %cst_16 = arith.constant dense<0.000000e+00> : vector<2x16x32xf32>
    %20 = tpu.matmul %2, %1, %cst_16 {dimension_numbers = #tpu.dot_dimension_numbers<[2], [1], [1], [2], [0, 0, 0, 1, 1, 2], [0], [0]>} : vector<2x16x16xf32>, vector<2x16x32xf32>, vector<2x16x32xf32> -> vector<2x16x32xf32>
    %cst_17 = arith.constant dense<0.000000e+00> : vector<2x16x32xf32>
    %21 = tpu.matmul %2, %20, %cst_17 {dimension_numbers = #tpu.dot_dimension_numbers<[2], [1], [1], [2], [0, 0, 0, 1, 1, 2], [0], [0]>} : vector<2x16x16xf32>, vector<2x16x32xf32>, vector<2x16x32xf32> -> vector<2x16x32xf32>
    "tpu.trace_stop"() : () -> ()
    %cst_18 = arith.constant 2.000000e+00 : f32
    %22 = vector.broadcast %cst_18 : f32 to vector<2x16x32xf32>
    %23 = arith.mulf %22, %21 : vector<2x16x32xf32>
    %24 = arith.subf %23, %1 : vector<2x16x32xf32>
    "tpu.trace_start"() <{level = 10 : i32, message = "bnm,bmc->bnc"}> : () -> ()
    %cst_19 = arith.constant dense<0.000000e+00> : vector<2x16x32xf32>
    %25 = tpu.matmul %3, %1, %cst_19 {dimension_numbers = #tpu.dot_dimension_numbers<[2], [1], [1], [2], [0, 0, 0, 1, 1, 2], [0], [0]>} : vector<2x16x16xf32>, vector<2x16x32xf32>, vector<2x16x32xf32> -> vector<2x16x32xf32>
    %cst_20 = arith.constant dense<0.000000e+00> : vector<2x16x32xf32>
    %26 = tpu.matmul %3, %25, %cst_20 {dimension_numbers = #tpu.dot_dimension_numbers<[2], [1], [1], [2], [0, 0, 0, 1, 1, 2], [0], [0]>} : vector<2x16x16xf32>, vector<2x16x32xf32>, vector<2x16x32xf32> -> vector<2x16x32xf32>
    "tpu.trace_stop"() : () -> ()
    %cst_21 = arith.constant 2.000000e+00 : f32
    %27 = vector.broadcast %cst_21 : f32 to vector<2x16x32xf32>
    %28 = arith.mulf %27, %26 : vector<2x16x32xf32>
    %29 = arith.subf %28, %1 : vector<2x16x32xf32>
    %30 = vector.shape_cast %1 : vector<2x16x32xf32> to vector<32x32xf32>
    %31 = vector.shape_cast %20 : vector<2x16x32xf32> to vector<32x32xf32>
    %32 = vector.shape_cast %24 : vector<2x16x32xf32> to vector<32x32xf32>
    %33 = vector.shape_cast %1 : vector<2x16x32xf32> to vector<32x32xf32>
    %34 = vector.shape_cast %25 : vector<2x16x32xf32> to vector<32x32xf32>
    %35 = vector.shape_cast %29 : vector<2x16x32xf32> to vector<32x32xf32>
    %c0_22 = arith.constant 0 : index
    %c0_23 = arith.constant 0 : index
    %c0_24 = arith.constant 0 : index
    %36 = vector.load %arg5[%c0_22, %c0_23, %c0_24] : memref<6x2x64xf32, #tpu.memory_space<vmem>>, vector<1x2x64xf32>
    %37 = vector.shape_cast %36 : vector<1x2x64xf32> to vector<2x64xf32>
    %cst_25 = arith.constant dense<0.000000e+00> : vector<32x64xf32>
    %38 = tpu.matmul %14, %37, %cst_25 {dimension_numbers = #tpu.dot_dimension_numbers<[1], [0], [0], [1], [0, 0, 1, 1], [], []>} : vector<32x2xf32>, vector<2x64xf32>, vector<32x64xf32> -> vector<32x64xf32>
    %c0_26 = arith.constant 0 : index
    %c0_27 = arith.constant 0 : index
    %c0_28 = arith.constant 0 : index
    %39 = vector.load %arg6[%c0_26, %c0_27, %c0_28] : memref<6x32x64xf32, #tpu.memory_space<vmem>>, vector<1x32x64xf32>
    %40 = vector.shape_cast %39 : vector<1x32x64xf32> to vector<32x64xf32>
    %cst_29 = arith.constant dense<0.000000e+00> : vector<32x64xf32>
    %41 = tpu.matmul %30, %40, %cst_29 {dimension_numbers = #tpu.dot_dimension_numbers<[1], [0], [0], [1], [0, 0, 1, 1], [], []>} : vector<32x32xf32>, vector<32x64xf32>, vector<32x64xf32> -> vector<32x64xf32>
    %42 = arith.addf %38, %41 : vector<32x64xf32>
    %c1 = arith.constant 1 : index
    %c0_30 = arith.constant 0 : index
    %c0_31 = arith.constant 0 : index
    %43 = vector.load %arg5[%c1, %c0_30, %c0_31] : memref<6x2x64xf32, #tpu.memory_space<vmem>>, vector<1x2x64xf32>
    %44 = vector.shape_cast %43 : vector<1x2x64xf32> to vector<2x64xf32>
    %cst_32 = arith.constant dense<0.000000e+00> : vector<32x64xf32>
    %45 = tpu.matmul %15, %44, %cst_32 {dimension_numbers = #tpu.dot_dimension_numbers<[1], [0], [0], [1], [0, 0, 1, 1], [], []>} : vector<32x2xf32>, vector<2x64xf32>, vector<32x64xf32> -> vector<32x64xf32>
    %c1_33 = arith.constant 1 : index
    %c0_34 = arith.constant 0 : index
    %c0_35 = arith.constant 0 : index
    %46 = vector.load %arg6[%c1_33, %c0_34, %c0_35] : memref<6x32x64xf32, #tpu.memory_space<vmem>>, vector<1x32x64xf32>
    %47 = vector.shape_cast %46 : vector<1x32x64xf32> to vector<32x64xf32>
    %cst_36 = arith.constant dense<0.000000e+00> : vector<32x64xf32>
    %48 = tpu.matmul %31, %47, %cst_36 {dimension_numbers = #tpu.dot_dimension_numbers<[1], [0], [0], [1], [0, 0, 1, 1], [], []>} : vector<32x32xf32>, vector<32x64xf32>, vector<32x64xf32> -> vector<32x64xf32>
    %49 = arith.addf %45, %48 : vector<32x64xf32>
    %50 = arith.addf %42, %49 : vector<32x64xf32>
    %c2 = arith.constant 2 : index
    %c0_37 = arith.constant 0 : index
    %c0_38 = arith.constant 0 : index
    %51 = vector.load %arg5[%c2, %c0_37, %c0_38] : memref<6x2x64xf32, #tpu.memory_space<vmem>>, vector<1x2x64xf32>
    %52 = vector.shape_cast %51 : vector<1x2x64xf32> to vector<2x64xf32>
    %cst_39 = arith.constant dense<0.000000e+00> : vector<32x64xf32>
    %53 = tpu.matmul %16, %52, %cst_39 {dimension_numbers = #tpu.dot_dimension_numbers<[1], [0], [0], [1], [0, 0, 1, 1], [], []>} : vector<32x2xf32>, vector<2x64xf32>, vector<32x64xf32> -> vector<32x64xf32>
    %c2_40 = arith.constant 2 : index
    %c0_41 = arith.constant 0 : index
    %c0_42 = arith.constant 0 : index
    %54 = vector.load %arg6[%c2_40, %c0_41, %c0_42] : memref<6x32x64xf32, #tpu.memory_space<vmem>>, vector<1x32x64xf32>
    %55 = vector.shape_cast %54 : vector<1x32x64xf32> to vector<32x64xf32>
    %cst_43 = arith.constant dense<0.000000e+00> : vector<32x64xf32>
    %56 = tpu.matmul %32, %55, %cst_43 {dimension_numbers = #tpu.dot_dimension_numbers<[1], [0], [0], [1], [0, 0, 1, 1], [], []>} : vector<32x32xf32>, vector<32x64xf32>, vector<32x64xf32> -> vector<32x64xf32>
    %57 = arith.addf %53, %56 : vector<32x64xf32>
    %58 = arith.addf %50, %57 : vector<32x64xf32>
    %c3 = arith.constant 3 : index
    %c0_44 = arith.constant 0 : index
    %c0_45 = arith.constant 0 : index
    %59 = vector.load %arg5[%c3, %c0_44, %c0_45] : memref<6x2x64xf32, #tpu.memory_space<vmem>>, vector<1x2x64xf32>
    %60 = vector.shape_cast %59 : vector<1x2x64xf32> to vector<2x64xf32>
    %cst_46 = arith.constant dense<0.000000e+00> : vector<32x64xf32>
    %61 = tpu.matmul %17, %60, %cst_46 {dimension_numbers = #tpu.dot_dimension_numbers<[1], [0], [0], [1], [0, 0, 1, 1], [], []>} : vector<32x2xf32>, vector<2x64xf32>, vector<32x64xf32> -> vector<32x64xf32>
    %c3_47 = arith.constant 3 : index
    %c0_48 = arith.constant 0 : index
    %c0_49 = arith.constant 0 : index
    %62 = vector.load %arg6[%c3_47, %c0_48, %c0_49] : memref<6x32x64xf32, #tpu.memory_space<vmem>>, vector<1x32x64xf32>
    %63 = vector.shape_cast %62 : vector<1x32x64xf32> to vector<32x64xf32>
    %cst_50 = arith.constant dense<0.000000e+00> : vector<32x64xf32>
    %64 = tpu.matmul %33, %63, %cst_50 {dimension_numbers = #tpu.dot_dimension_numbers<[1], [0], [0], [1], [0, 0, 1, 1], [], []>} : vector<32x32xf32>, vector<32x64xf32>, vector<32x64xf32> -> vector<32x64xf32>
    %65 = arith.addf %61, %64 : vector<32x64xf32>
    %66 = arith.addf %58, %65 : vector<32x64xf32>
    %c4 = arith.constant 4 : index
    %c0_51 = arith.constant 0 : index
    %c0_52 = arith.constant 0 : index
    %67 = vector.load %arg5[%c4, %c0_51, %c0_52] : memref<6x2x64xf32, #tpu.memory_space<vmem>>, vector<1x2x64xf32>
    %68 = vector.shape_cast %67 : vector<1x2x64xf32> to vector<2x64xf32>
    %cst_53 = arith.constant dense<0.000000e+00> : vector<32x64xf32>
    %69 = tpu.matmul %18, %68, %cst_53 {dimension_numbers = #tpu.dot_dimension_numbers<[1], [0], [0], [1], [0, 0, 1, 1], [], []>} : vector<32x2xf32>, vector<2x64xf32>, vector<32x64xf32> -> vector<32x64xf32>
    %c4_54 = arith.constant 4 : index
    %c0_55 = arith.constant 0 : index
    %c0_56 = arith.constant 0 : index
    %70 = vector.load %arg6[%c4_54, %c0_55, %c0_56] : memref<6x32x64xf32, #tpu.memory_space<vmem>>, vector<1x32x64xf32>
    %71 = vector.shape_cast %70 : vector<1x32x64xf32> to vector<32x64xf32>
    %cst_57 = arith.constant dense<0.000000e+00> : vector<32x64xf32>
    %72 = tpu.matmul %34, %71, %cst_57 {dimension_numbers = #tpu.dot_dimension_numbers<[1], [0], [0], [1], [0, 0, 1, 1], [], []>} : vector<32x32xf32>, vector<32x64xf32>, vector<32x64xf32> -> vector<32x64xf32>
    %73 = arith.addf %69, %72 : vector<32x64xf32>
    %74 = arith.addf %66, %73 : vector<32x64xf32>
    %c5 = arith.constant 5 : index
    %c0_58 = arith.constant 0 : index
    %c0_59 = arith.constant 0 : index
    %75 = vector.load %arg5[%c5, %c0_58, %c0_59] : memref<6x2x64xf32, #tpu.memory_space<vmem>>, vector<1x2x64xf32>
    %76 = vector.shape_cast %75 : vector<1x2x64xf32> to vector<2x64xf32>
    %cst_60 = arith.constant dense<0.000000e+00> : vector<32x64xf32>
    %77 = tpu.matmul %19, %76, %cst_60 {dimension_numbers = #tpu.dot_dimension_numbers<[1], [0], [0], [1], [0, 0, 1, 1], [], []>} : vector<32x2xf32>, vector<2x64xf32>, vector<32x64xf32> -> vector<32x64xf32>
    %c5_61 = arith.constant 5 : index
    %c0_62 = arith.constant 0 : index
    %c0_63 = arith.constant 0 : index
    %78 = vector.load %arg6[%c5_61, %c0_62, %c0_63] : memref<6x32x64xf32, #tpu.memory_space<vmem>>, vector<1x32x64xf32>
    %79 = vector.shape_cast %78 : vector<1x32x64xf32> to vector<32x64xf32>
    %cst_64 = arith.constant dense<0.000000e+00> : vector<32x64xf32>
    %80 = tpu.matmul %35, %79, %cst_64 {dimension_numbers = #tpu.dot_dimension_numbers<[1], [0], [0], [1], [0, 0, 1, 1], [], []>} : vector<32x32xf32>, vector<32x64xf32>, vector<32x64xf32> -> vector<32x64xf32>
    %81 = arith.addf %77, %80 : vector<32x64xf32>
    %82 = arith.addf %74, %81 : vector<32x64xf32>
    %c0_65 = arith.constant 0 : index
    %c0_66 = arith.constant 0 : index
    %83 = vector.load %arg7[%c0_65, %c0_66] : memref<1x64xf32, #tpu.memory_space<vmem>>, vector<1x64xf32>
    %84 = vector.broadcast %83 : vector<1x64xf32> to vector<32x64xf32>
    %85 = arith.addf %82, %84 : vector<32x64xf32>
    %86 = arith.negf %85 : vector<32x64xf32>
    %87 = math.exp %86 : vector<32x64xf32>
    %cst_67 = arith.constant 1.000000e+00 : f32
    %88 = vector.broadcast %cst_67 : f32 to vector<32x64xf32>
    %89 = arith.addf %88, %87 : vector<32x64xf32>
    %90 = arith.divf %88, %89 : vector<32x64xf32>
    %91 = vector.extract_strided_slice %90 {offsets = [0, 0], sizes = [32, 32], strides = [1, 1]} : vector<32x64xf32> to vector<32x32xf32>
    %92 = vector.extract_strided_slice %90 {offsets = [0, 32], sizes = [32, 32], strides = [1, 1]} : vector<32x64xf32> to vector<32x32xf32>
    %93 = vector.shape_cast %1 : vector<2x16x32xf32> to vector<32x32xf32>
    %94 = arith.mulf %91, %93 : vector<32x32xf32>
    %95 = vector.shape_cast %94 : vector<32x32xf32> to vector<2x16x32xf32>
    "tpu.trace_start"() <{level = 10 : i32, message = "bnm,bmc->bnc"}> : () -> ()
    %cst_68 = arith.constant dense<0.000000e+00> : vector<2x16x32xf32>
    %96 = tpu.matmul %2, %95, %cst_68 {dimension_numbers = #tpu.dot_dimension_numbers<[2], [1], [1], [2], [0, 0, 0, 1, 1, 2], [0], [0]>} : vector<2x16x16xf32>, vector<2x16x32xf32>, vector<2x16x32xf32> -> vector<2x16x32xf32>
    %cst_69 = arith.constant dense<0.000000e+00> : vector<2x16x32xf32>
    %97 = tpu.matmul %2, %96, %cst_69 {dimension_numbers = #tpu.dot_dimension_numbers<[2], [1], [1], [2], [0, 0, 0, 1, 1, 2], [0], [0]>} : vector<2x16x16xf32>, vector<2x16x32xf32>, vector<2x16x32xf32> -> vector<2x16x32xf32>
    "tpu.trace_stop"() : () -> ()
    %cst_70 = arith.constant 2.000000e+00 : f32
    %98 = vector.broadcast %cst_70 : f32 to vector<2x16x32xf32>
    %99 = arith.mulf %98, %97 : vector<2x16x32xf32>
    %100 = arith.subf %99, %95 : vector<2x16x32xf32>
    "tpu.trace_start"() <{level = 10 : i32, message = "bnm,bmc->bnc"}> : () -> ()
    %cst_71 = arith.constant dense<0.000000e+00> : vector<2x16x32xf32>
    %101 = tpu.matmul %3, %95, %cst_71 {dimension_numbers = #tpu.dot_dimension_numbers<[2], [1], [1], [2], [0, 0, 0, 1, 1, 2], [0], [0]>} : vector<2x16x16xf32>, vector<2x16x32xf32>, vector<2x16x32xf32> -> vector<2x16x32xf32>
    %cst_72 = arith.constant dense<0.000000e+00> : vector<2x16x32xf32>
    %102 = tpu.matmul %3, %101, %cst_72 {dimension_numbers = #tpu.dot_dimension_numbers<[2], [1], [1], [2], [0, 0, 0, 1, 1, 2], [0], [0]>} : vector<2x16x16xf32>, vector<2x16x32xf32>, vector<2x16x32xf32> -> vector<2x16x32xf32>
    "tpu.trace_stop"() : () -> ()
    %cst_73 = arith.constant 2.000000e+00 : f32
    %103 = vector.broadcast %cst_73 : f32 to vector<2x16x32xf32>
    %104 = arith.mulf %103, %102 : vector<2x16x32xf32>
    %105 = arith.subf %104, %95 : vector<2x16x32xf32>
    %106 = vector.shape_cast %95 : vector<2x16x32xf32> to vector<32x32xf32>
    %107 = vector.shape_cast %96 : vector<2x16x32xf32> to vector<32x32xf32>
    %108 = vector.shape_cast %100 : vector<2x16x32xf32> to vector<32x32xf32>
    %109 = vector.shape_cast %95 : vector<2x16x32xf32> to vector<32x32xf32>
    %110 = vector.shape_cast %101 : vector<2x16x32xf32> to vector<32x32xf32>
    %111 = vector.shape_cast %105 : vector<2x16x32xf32> to vector<32x32xf32>
    %c0_74 = arith.constant 0 : index
    %c0_75 = arith.constant 0 : index
    %c0_76 = arith.constant 0 : index
    %112 = vector.load %arg8[%c0_74, %c0_75, %c0_76] : memref<6x2x32xf32, #tpu.memory_space<vmem>>, vector<1x2x32xf32>
    %113 = vector.shape_cast %112 : vector<1x2x32xf32> to vector<2x32xf32>
    %cst_77 = arith.constant dense<0.000000e+00> : vector<32x32xf32>
    %114 = tpu.matmul %14, %113, %cst_77 {dimension_numbers = #tpu.dot_dimension_numbers<[1], [0], [0], [1], [0, 0, 1, 1], [], []>} : vector<32x2xf32>, vector<2x32xf32>, vector<32x32xf32> -> vector<32x32xf32>
    %c0_78 = arith.constant 0 : index
    %c0_79 = arith.constant 0 : index
    %c0_80 = arith.constant 0 : index
    %115 = vector.load %arg9[%c0_78, %c0_79, %c0_80] : memref<6x32x32xf32, #tpu.memory_space<vmem>>, vector<1x32x32xf32>
    %116 = vector.shape_cast %115 : vector<1x32x32xf32> to vector<32x32xf32>
    %cst_81 = arith.constant dense<0.000000e+00> : vector<32x32xf32>
    %117 = tpu.matmul %106, %116, %cst_81 {dimension_numbers = #tpu.dot_dimension_numbers<[1], [0], [0], [1], [0, 0, 1, 1], [], []>} : vector<32x32xf32>, vector<32x32xf32>, vector<32x32xf32> -> vector<32x32xf32>
    %118 = arith.addf %114, %117 : vector<32x32xf32>
    %c1_82 = arith.constant 1 : index
    %c0_83 = arith.constant 0 : index
    %c0_84 = arith.constant 0 : index
    %119 = vector.load %arg8[%c1_82, %c0_83, %c0_84] : memref<6x2x32xf32, #tpu.memory_space<vmem>>, vector<1x2x32xf32>
    %120 = vector.shape_cast %119 : vector<1x2x32xf32> to vector<2x32xf32>
    %cst_85 = arith.constant dense<0.000000e+00> : vector<32x32xf32>
    %121 = tpu.matmul %15, %120, %cst_85 {dimension_numbers = #tpu.dot_dimension_numbers<[1], [0], [0], [1], [0, 0, 1, 1], [], []>} : vector<32x2xf32>, vector<2x32xf32>, vector<32x32xf32> -> vector<32x32xf32>
    %c1_86 = arith.constant 1 : index
    %c0_87 = arith.constant 0 : index
    %c0_88 = arith.constant 0 : index
    %122 = vector.load %arg9[%c1_86, %c0_87, %c0_88] : memref<6x32x32xf32, #tpu.memory_space<vmem>>, vector<1x32x32xf32>
    %123 = vector.shape_cast %122 : vector<1x32x32xf32> to vector<32x32xf32>
    %cst_89 = arith.constant dense<0.000000e+00> : vector<32x32xf32>
    %124 = tpu.matmul %107, %123, %cst_89 {dimension_numbers = #tpu.dot_dimension_numbers<[1], [0], [0], [1], [0, 0, 1, 1], [], []>} : vector<32x32xf32>, vector<32x32xf32>, vector<32x32xf32> -> vector<32x32xf32>
    %125 = arith.addf %121, %124 : vector<32x32xf32>
    %126 = arith.addf %118, %125 : vector<32x32xf32>
    %c2_90 = arith.constant 2 : index
    %c0_91 = arith.constant 0 : index
    %c0_92 = arith.constant 0 : index
    %127 = vector.load %arg8[%c2_90, %c0_91, %c0_92] : memref<6x2x32xf32, #tpu.memory_space<vmem>>, vector<1x2x32xf32>
    %128 = vector.shape_cast %127 : vector<1x2x32xf32> to vector<2x32xf32>
    %cst_93 = arith.constant dense<0.000000e+00> : vector<32x32xf32>
    %129 = tpu.matmul %16, %128, %cst_93 {dimension_numbers = #tpu.dot_dimension_numbers<[1], [0], [0], [1], [0, 0, 1, 1], [], []>} : vector<32x2xf32>, vector<2x32xf32>, vector<32x32xf32> -> vector<32x32xf32>
    %c2_94 = arith.constant 2 : index
    %c0_95 = arith.constant 0 : index
    %c0_96 = arith.constant 0 : index
    %130 = vector.load %arg9[%c2_94, %c0_95, %c0_96] : memref<6x32x32xf32, #tpu.memory_space<vmem>>, vector<1x32x32xf32>
    %131 = vector.shape_cast %130 : vector<1x32x32xf32> to vector<32x32xf32>
    %cst_97 = arith.constant dense<0.000000e+00> : vector<32x32xf32>
    %132 = tpu.matmul %108, %131, %cst_97 {dimension_numbers = #tpu.dot_dimension_numbers<[1], [0], [0], [1], [0, 0, 1, 1], [], []>} : vector<32x32xf32>, vector<32x32xf32>, vector<32x32xf32> -> vector<32x32xf32>
    %133 = arith.addf %129, %132 : vector<32x32xf32>
    %134 = arith.addf %126, %133 : vector<32x32xf32>
    %c3_98 = arith.constant 3 : index
    %c0_99 = arith.constant 0 : index
    %c0_100 = arith.constant 0 : index
    %135 = vector.load %arg8[%c3_98, %c0_99, %c0_100] : memref<6x2x32xf32, #tpu.memory_space<vmem>>, vector<1x2x32xf32>
    %136 = vector.shape_cast %135 : vector<1x2x32xf32> to vector<2x32xf32>
    %cst_101 = arith.constant dense<0.000000e+00> : vector<32x32xf32>
    %137 = tpu.matmul %17, %136, %cst_101 {dimension_numbers = #tpu.dot_dimension_numbers<[1], [0], [0], [1], [0, 0, 1, 1], [], []>} : vector<32x2xf32>, vector<2x32xf32>, vector<32x32xf32> -> vector<32x32xf32>
    %c3_102 = arith.constant 3 : index
    %c0_103 = arith.constant 0 : index
    %c0_104 = arith.constant 0 : index
    %138 = vector.load %arg9[%c3_102, %c0_103, %c0_104] : memref<6x32x32xf32, #tpu.memory_space<vmem>>, vector<1x32x32xf32>
    %139 = vector.shape_cast %138 : vector<1x32x32xf32> to vector<32x32xf32>
    %cst_105 = arith.constant dense<0.000000e+00> : vector<32x32xf32>
    %140 = tpu.matmul %109, %139, %cst_105 {dimension_numbers = #tpu.dot_dimension_numbers<[1], [0], [0], [1], [0, 0, 1, 1], [], []>} : vector<32x32xf32>, vector<32x32xf32>, vector<32x32xf32> -> vector<32x32xf32>
    %141 = arith.addf %137, %140 : vector<32x32xf32>
    %142 = arith.addf %134, %141 : vector<32x32xf32>
    %c4_106 = arith.constant 4 : index
    %c0_107 = arith.constant 0 : index
    %c0_108 = arith.constant 0 : index
    %143 = vector.load %arg8[%c4_106, %c0_107, %c0_108] : memref<6x2x32xf32, #tpu.memory_space<vmem>>, vector<1x2x32xf32>
    %144 = vector.shape_cast %143 : vector<1x2x32xf32> to vector<2x32xf32>
    %cst_109 = arith.constant dense<0.000000e+00> : vector<32x32xf32>
    %145 = tpu.matmul %18, %144, %cst_109 {dimension_numbers = #tpu.dot_dimension_numbers<[1], [0], [0], [1], [0, 0, 1, 1], [], []>} : vector<32x2xf32>, vector<2x32xf32>, vector<32x32xf32> -> vector<32x32xf32>
    %c4_110 = arith.constant 4 : index
    %c0_111 = arith.constant 0 : index
    %c0_112 = arith.constant 0 : index
    %146 = vector.load %arg9[%c4_110, %c0_111, %c0_112] : memref<6x32x32xf32, #tpu.memory_space<vmem>>, vector<1x32x32xf32>
    %147 = vector.shape_cast %146 : vector<1x32x32xf32> to vector<32x32xf32>
    %cst_113 = arith.constant dense<0.000000e+00> : vector<32x32xf32>
    %148 = tpu.matmul %110, %147, %cst_113 {dimension_numbers = #tpu.dot_dimension_numbers<[1], [0], [0], [1], [0, 0, 1, 1], [], []>} : vector<32x32xf32>, vector<32x32xf32>, vector<32x32xf32> -> vector<32x32xf32>
    %149 = arith.addf %145, %148 : vector<32x32xf32>
    %150 = arith.addf %142, %149 : vector<32x32xf32>
    %c5_114 = arith.constant 5 : index
    %c0_115 = arith.constant 0 : index
    %c0_116 = arith.constant 0 : index
    %151 = vector.load %arg8[%c5_114, %c0_115, %c0_116] : memref<6x2x32xf32, #tpu.memory_space<vmem>>, vector<1x2x32xf32>
    %152 = vector.shape_cast %151 : vector<1x2x32xf32> to vector<2x32xf32>
    %cst_117 = arith.constant dense<0.000000e+00> : vector<32x32xf32>
    %153 = tpu.matmul %19, %152, %cst_117 {dimension_numbers = #tpu.dot_dimension_numbers<[1], [0], [0], [1], [0, 0, 1, 1], [], []>} : vector<32x2xf32>, vector<2x32xf32>, vector<32x32xf32> -> vector<32x32xf32>
    %c5_118 = arith.constant 5 : index
    %c0_119 = arith.constant 0 : index
    %c0_120 = arith.constant 0 : index
    %154 = vector.load %arg9[%c5_118, %c0_119, %c0_120] : memref<6x32x32xf32, #tpu.memory_space<vmem>>, vector<1x32x32xf32>
    %155 = vector.shape_cast %154 : vector<1x32x32xf32> to vector<32x32xf32>
    %cst_121 = arith.constant dense<0.000000e+00> : vector<32x32xf32>
    %156 = tpu.matmul %111, %155, %cst_121 {dimension_numbers = #tpu.dot_dimension_numbers<[1], [0], [0], [1], [0, 0, 1, 1], [], []>} : vector<32x32xf32>, vector<32x32xf32>, vector<32x32xf32> -> vector<32x32xf32>
    %157 = arith.addf %153, %156 : vector<32x32xf32>
    %158 = arith.addf %150, %157 : vector<32x32xf32>
    %c0_122 = arith.constant 0 : index
    %c0_123 = arith.constant 0 : index
    %159 = vector.load %arg10[%c0_122, %c0_123] : memref<1x32xf32, #tpu.memory_space<vmem>>, vector<1x32xf32>
    %160 = vector.broadcast %159 : vector<1x32xf32> to vector<32x32xf32>
    %161 = arith.addf %158, %160 : vector<32x32xf32>
    %162 = math.tanh %161 : vector<32x32xf32>
    %163 = arith.mulf %92, %93 : vector<32x32xf32>
    %cst_124 = arith.constant 1.000000e+00 : f32
    %164 = vector.broadcast %cst_124 : f32 to vector<32x32xf32>
    %165 = arith.subf %164, %92 : vector<32x32xf32>
    %166 = arith.mulf %165, %162 : vector<32x32xf32>
    %167 = arith.addf %163, %166 : vector<32x32xf32>
    %168 = vector.shape_cast %167 : vector<32x32xf32> to vector<2x16x32xf32>
    %c0_125 = arith.constant 0 : index
    %c0_126 = arith.constant 0 : index
    %c0_127 = arith.constant 0 : index
    %169 = vector.load %arg11[%c0_125, %c0_126, %c0_127] : memref<2x16x32xf32, #tpu.memory_space<vmem>>, vector<2x16x32xf32>
    tpu.vector_store %arg11[%c0_125, %c0_126, %c0_127], %168 {strides = array<i32>} : memref<2x16x32xf32, #tpu.memory_space<vmem>>, vector<2x16x32xf32>,
    return
  }
  func.func @transform_0(%arg0: i32) -> (i32, i32, i32) {
    %c0_i32 = arith.constant 0 : i32
    %c0_i32_0 = arith.constant 0 : i32
    %c0_i32_1 = arith.constant 0 : i32
    return %arg0, %c0_i32, %c0_i32_0 : i32, i32, i32
  }
  func.func @transform_1(%arg0: i32) -> (i32, i32, i32) {
    %c0_i32 = arith.constant 0 : i32
    %c0_i32_0 = arith.constant 0 : i32
    %c0_i32_1 = arith.constant 0 : i32
    return %arg0, %c0_i32, %c0_i32_0 : i32, i32, i32
  }
  func.func @transform_2(%arg0: i32) -> (i32, i32, i32) {
    %c0_i32 = arith.constant 0 : i32
    %c0_i32_0 = arith.constant 0 : i32
    %c0_i32_1 = arith.constant 0 : i32
    return %arg0, %c0_i32, %c0_i32_0 : i32, i32, i32
  }
  func.func @transform_3(%arg0: i32) -> (i32, i32, i32) {
    %c0_i32 = arith.constant 0 : i32
    %c0_i32_0 = arith.constant 0 : i32
    %c0_i32_1 = arith.constant 0 : i32
    return %arg0, %c0_i32, %c0_i32_0 : i32, i32, i32
  }
  func.func @transform_4(%arg0: i32) -> (i32, i32, i32) {
    %c0_i32 = arith.constant 0 : i32
    %c0_i32_0 = arith.constant 0 : i32
    %c0_i32_1 = arith.constant 0 : i32
    %c0_i32_2 = arith.constant 0 : i32
    return %c0_i32, %c0_i32_0, %c0_i32_1 : i32, i32, i32
  }
  func.func @transform_5(%arg0: i32) -> (i32, i32, i32) {
    %c0_i32 = arith.constant 0 : i32
    %c0_i32_0 = arith.constant 0 : i32
    %c0_i32_1 = arith.constant 0 : i32
    %c0_i32_2 = arith.constant 0 : i32
    return %c0_i32, %c0_i32_0, %c0_i32_1 : i32, i32, i32
  }
  func.func @transform_6(%arg0: i32) -> (i32, i32) {
    %c0_i32 = arith.constant 0 : i32
    %c0_i32_0 = arith.constant 0 : i32
    %c0_i32_1 = arith.constant 0 : i32
    return %c0_i32, %c0_i32_0 : i32, i32
  }
  func.func @transform_7(%arg0: i32) -> (i32, i32, i32) {
    %c0_i32 = arith.constant 0 : i32
    %c0_i32_0 = arith.constant 0 : i32
    %c0_i32_1 = arith.constant 0 : i32
    %c0_i32_2 = arith.constant 0 : i32
    return %c0_i32, %c0_i32_0, %c0_i32_1 : i32, i32, i32
  }
  func.func @transform_8(%arg0: i32) -> (i32, i32, i32) {
    %c0_i32 = arith.constant 0 : i32
    %c0_i32_0 = arith.constant 0 : i32
    %c0_i32_1 = arith.constant 0 : i32
    %c0_i32_2 = arith.constant 0 : i32
    return %c0_i32, %c0_i32_0, %c0_i32_1 : i32, i32, i32
  }
  func.func @transform_9(%arg0: i32) -> (i32, i32) {
    %c0_i32 = arith.constant 0 : i32
    %c0_i32_0 = arith.constant 0 : i32
    %c0_i32_1 = arith.constant 0 : i32
    return %c0_i32, %c0_i32_0 : i32, i32
  }
  func.func @transform_10(%arg0: i32) -> (i32, i32, i32) {
    %c0_i32 = arith.constant 0 : i32
    %c0_i32_0 = arith.constant 0 : i32
    %c0_i32_1 = arith.constant 0 : i32
    return %arg0, %c0_i32, %c0_i32_0 : i32, i32, i32
  }
}

</mosaic_0001>

<bundles_post_ra>
// kernel: agcrn_cell.1
= control target key start
LH: loop header
LB: loop body
LE: loop exit
PB: predicated region body
PF: predicated region fallthrough
CT: control target
= control target key end

     0   :  { %vm52_vm0 = vcmask 130048   ;;  %s6513_s0 = inlined_call_operand.vmem [shape: f32[2,16,2], index: 0, kind: input, shape index: {}]   ;;  %s6514_s1 = inlined_call_operand.vmem [shape: f32[2,16,32], index: 1, kind: input, shape index: {}]   ;;  %s6515_s2 = inlined_call_operand.vmem [shape: f32[2,16,16], index: 2, kind: input, shape index: {}]   ;;  %s6516_s3 = inlined_call_operand.vmem [shape: f32[2,16,16], index: 3, kind: input, shape index: {}]   ;;  %s6517_s4 = inlined_call_operand.vmem [shape: f32[6,2,64], index: 4, kind: input, shape index: {}]   ;;  %s6518_s5 = inlined_call_operand.vmem [shape: f32[6,32,64], index: 5, kind: input, shape index: {}]   ;;  %s6519_s6 = inlined_call_operand.vmem [shape: f32[1,64], index: 6, kind: input, shape index: {}]   ;;  %s6520_s7 = inlined_call_operand.vmem [shape: f32[6,2,32], index: 7, kind: input, shape index: {}]   ;;  %s6521_s8 = inlined_call_operand.vmem [shape: f32[6,32,32], index: 8, kind: input, shape index: {}]   ;;  %s6522_s9 = inlined_call_operand.vmem [shape: f32[1,32], index: 9, kind: input, shape index: {}]   ;;  %s6523_s10 = inlined_call_operand.hbm [shape: f32[2,16,32], index: 10, kind: output, shape index: {}]  }
   0x1   :  { %v5730_v0 = vld [vmem:[%s6513_s0] sm:$0xff]  ;;  %v5735_v1 = vld [vmem:[%s6513_s0 + $0x8] sm:$0xff]  ;;  %v5749_v4 = vld [vmem:[%s6513_s0 + $0x10] sm:$0xff] }
   0x2   :  { %v5740_v2 = vld [vmem:[%s6515_s2] sm:$0xff]  ;;  %v5334_v3 = vpack.c.bf16 %v5735_v1, %v5730_v0  ;;  %v5754_v5 = vld [vmem:[%s6513_s0 + $0x18] sm:$0xff]  ;;  %v5761_v7 = vld [vmem:[%s6515_s2 + $0x10] sm:$0xff] }
   0x3   :  { %4906 = vmatprep.mubr.msk.f32.mxu0 %vm52_vm0, %v5740_v2  ;;  %v5338_v6 = vpack.c.bf16 %v5754_v5, %v5749_v4 }
   0x4   :  { %15 = vsyncpa [#allocation3], 0  ;;  %5335 = vmatprep.subr.bf16.mxu0 %v5334_v3  ;;  %4927 = vmatprep.mubr.msk.f32.mxu1 %vm52_vm0, %v5761_v7  ;;  %v5768_v8 = vld [vmem:[%s6515_s2 + $0x8] sm:$0xff]  ;;  %v5777_v9 = vld [vmem:[%s6515_s2 + $0x18] sm:$0xff]  ;;  %vm1314_vm1 = vcmask 261120   ;;  %vm1425_vm2 = vcmask 1041408  }
   0x5   :  { %5337 = vmatpush3.bf16.msra.mxu0 %v5334_v3  ;;  %v5798_v16 = vld [vmem:[%s6516_s3] sm:$0xff]  ;;  %v5805_v17 = vld [vmem:[%s6516_s3 + $0x8] sm:$0xff]  ;;  %v5812_v18 = vld [vmem:[%s6516_s3 + $0x10] sm:$0xff]  ;;  %vm1412_vm3 = vcmask 15360   ;;  %s5667_s11 = smov 32  }
   0x6   :  { %5339 = vmatprep.subr.bf16.mxu0 %v5338_v6  ;;  %v5823_v19 = vld [vmem:[%s6516_s3 + $0x18] sm:$0xff]  ;;  %v5838_v22 = vld [vmem:[%s6514_s1] sm:$0xff]  ;;  %v5843_v23 = vld [vmem:[%s6514_s1 + $0x8] sm:$0xff] }
   0x7   :  { %v5366_v29 = vpack.c.bf16 %v5843_v23, %v5838_v22  ;;  %v5860_v30 = vld [vmem:[%s6514_s1 + $0x10] sm:$0xff]  ;;  %v5865_v31 = vld [vmem:[%s6514_s1 + $0x18] sm:$0xff]  ;;  %v1310_v48 = vld [vmem:[%s6518_s5] sm:$0xff]  ;;  %4358 = vrot.lane.b32.xlu0 %v5838_v22, %s5667_s11 }
   0x8   :  { %4907 = vmatmul.mubr.msk.f32.vlgmr.msra.gmra.mrb[0].mxu0 %vm52_vm0, %v5768_v8  ;;  %v5370_v35 = vpack.c.bf16 %v5865_v31, %v5860_v30  ;;  %v1311_v49 = vld [vmem:[%s6518_s5 + $0x8] sm:$0xff]  ;;  %v1312_v56 = vld [vmem:[%s6518_s5 + $0x10] sm:$0xff]  ;;  %v1313_v57 = vld [vmem:[%s6518_s5 + $0x18] sm:$0xff]  ;;  %4362 = vrot.lane.b32.xlu1 %v5860_v30, %s5667_s11 }
   0x9   :  { %5341 = vmatpush3.bf16.msra.mxu0 %v5338_v6  ;;  %4913 = vmatprep.mubr.msk.f32.mxu0 %vm52_vm0, %v5761_v7  ;;  %v5398_v55 = vpack.c.bf16 %v1311_v49, %v1310_v48  ;;  %v5402_v61 = vpack.c.bf16 %v1313_v57, %v1312_v56  ;;  %v1309_v62 = vld [vmem:[%s6517_s4] sm:$0x3] }
   0xa   :  { %v4480_v63 = vld [vmem:[%s6518_s5 + $0x20] sm:$0xff] }
   0xb   :  { %4360 = vrot.lane.b32.xlu0 %v5843_v23, %s5667_s11 }
   0xc   :  { %4914 = vmatmul.mubr.msk.f32.vlgmr.msra.gmra.mrb[2].mxu0 %vm52_vm0, %v5777_v9  ;;  %4364 = vrot.lane.b32.xlu1 %v5865_v31, %s5667_s11 }
   0xd   :  { %4920 = vmatprep.mubr.msk.f32.mxu0 %vm52_vm0, %v5740_v2 }
  0xdb   :  { %v5783_v10 = vpop.f32.mrb[0].mxu0 }
  0xdc   :  { %v5785_v11 = vpop.f32.mrb[1].mxu0 }
  0xdd   :  { %v5342_v12 = vpack.c.bf16 %v5783_v10, %v5785_v11 }
  0xdf   :  { %v5789_v13 = vpop.f32.mrb[2].mxu0  ;;  %5343 = vmatprep.subr.bf16.mxu0 %v5342_v12 }
  0xe0   :  { %v5791_v14 = vpop.f32.mrb[3].mxu0  ;;  %5345 = vmatpush3.bf16.msra.mxu0 %v5342_v12  ;;  %v4482_v12 = vld [vmem:[%s6518_s5 + $0x30] sm:$0xff] }
  0xe1   :  { %v5346_v15 = vpack.c.bf16 %v5789_v13, %v5791_v14  ;;  %5351 = vmatprep.subr.bf16.mxu0 %v5334_v3 }
  0xe3   :  { %4921 = vmatmul.mubr.msk.f32.vlgmr.msra.gmra.mrb[4].mxu0 %vm52_vm0, %v5768_v8  ;;  %5347 = vmatprep.subr.bf16.mxu1 %v5346_v15 }
  0xe4   :  { %5349 = vmatpush3.bf16.msra.mxu1 %v5346_v15  ;;  %5353 = vmatpush3.bf16.msra.mxu0 %v5334_v3  ;;  %v4481_v3 = vld [vmem:[%s6518_s5 + $0x28] sm:$0xff]  ;;  %v4483_v15 = vld [vmem:[%s6518_s5 + $0x38] sm:$0xff] }
  0xe5   :  { %4934 = vmatprep.mubr.msk.f32.mxu0 %vm52_vm0, %v5798_v16  ;;  %5355 = vmatprep.subr.bf16.mxu1 %v5338_v6 }
  0xe7   :  { %4928 = vmatmul.mubr.msk.f32.vlgmr.msra.gmra.mrb[0].mxu1 %vm52_vm0, %v5777_v9  ;;  %4935 = vmatmul.mubr.msk.f32.vlgmr.msra.gmra.mrb[6].mxu0 %vm52_vm0, %v5805_v17 }
  0xe8   :  { %5357 = vmatpush3.bf16.msra.mxu1 %v5338_v6  ;;  %4941 = vmatprep.mubr.msk.f32.mxu1 %vm52_vm0, %v5812_v18  ;;  %v5406_v6 = vpack.c.bf16 %v4481_v3, %v4480_v63  ;;  %v4511_v3 = vld [vmem:[%s6518_s5 + $0x78] sm:$0xff] }
  0xe9   :  { %4948 = vmatprep.mubr.msk.f32.mxu0 %vm52_vm0, %v5798_v16 }
  0xeb   :  { %4942 = vmatmul.mubr.msk.f32.vlgmr.msra.gmra.mrb[2].mxu1 %vm52_vm0, %v5823_v19 }
  0xec   :  { %4955 = vmatprep.mubr.msk.f32.mxu1 %vm52_vm0, %v5812_v18 }
 0x1b6   :  { %v5831_v20 = vpop.f32.mrb[4].mxu0 }
 0x1b7   :  { %v5833_v21 = vpop.f32.mrb[5].mxu0 }
 0x1b8   :  { %v365_v57 = vmul.f32 2.0, %v5833_v21  ;;  %v4510_v21 = vld [vmem:[%s6518_s5 + $0x70] sm:$0xff] }
 0x1ba   :  { %v5845_v24 = vpop.f32.mrb[0].mxu1  ;;  %v5847_v25 = vpop.f32.mrb[6].mxu0 }
 0x1bb   :  { %v5849_v26 = vpop.f32.mrb[1].mxu1  ;;  %v5851_v27 = vpop.f32.mrb[7].mxu0 }
 0x1bc   :  { %v5358_v28 = vpack.c.bf16 %v5847_v25, %v5851_v27  ;;  %v367_v63 = vmul.f32 2.0, %v5849_v26 }
 0x1be   :  { %v5867_v32 = vpop.f32.mrb[2].mxu1  ;;  %5359 = vmatprep.subr.bf16.mxu0 %v5358_v28  ;;  %v6073_v26 = vsub.f32 %v367_v63, %v5749_v4 }
 0x1bf   :  { %v5869_v33 = vpop.f32.mrb[3].mxu1  ;;  %5361 = vmatpush3.bf16.msra.mxu0 %v5358_v28  ;;  %v5410_v28 = vpack.c.bf16 %v4483_v15, %v4482_v12  ;;  %v5426_v12 = vpack.c.bf16 %v4511_v3, %v4510_v21 }
 0x1c0   :  { %v5362_v34 = vpack.c.bf16 %v5867_v32, %v5869_v33  ;;  %5367 = vmatprep.subr.bf16.mxu0 %v5366_v29 }
 0x1c2   :  { %4949 = vmatmul.mubr.msk.f32.vlgmr.msra.gmra.mrb[8].mxu0 %vm52_vm0, %v5805_v17  ;;  %5363 = vmatprep.subr.bf16.mxu1 %v5362_v34 }
 0x1c3   :  { %5365 = vmatpush3.bf16.msra.mxu1 %v5362_v34  ;;  %5369 = vmatpush3.bf16.msra.mxu0 %v5366_v29  ;;  %v4494_v34 = vld [vmem:[%s6518_s5 + $0x40] sm:$0xff] }
 0x1c4   :  { %4962 = vmatprep.mubr.msk.f32.mxu0 %vm52_vm0, %v5740_v2  ;;  %5371 = vmatprep.subr.bf16.mxu1 %v5370_v35 }
 0x1c6   :  { %4956 = vmatmul.mubr.msk.f32.vlgmr.msra.gmra.mrb[4].mxu1 %vm52_vm0, %v5823_v19  ;;  %4963 = vmatmul.mubr.msk.f32.vlgmr.msra.gmra.mrb[10].mxu0 %vm52_vm0, %v5768_v8 }
 0x1c7   :  { %5373 = vmatpush3.bf16.msra.mxu1 %v5370_v35  ;;  %4969 = vmatprep.mubr.msk.f32.mxu1 %vm52_vm0, %v5761_v7 }
 0x1c8   :  { %4976 = vmatprep.mubr.msk.f32.mxu0 %vm52_vm0, %v5740_v2 }
 0x1ca   :  { %4970 = vmatmul.mubr.msk.f32.vlgmr.msra.gmra.mrb[6].mxu1 %vm52_vm0, %v5777_v9 }
 0x1cb   :  { %4983 = vmatprep.mubr.msk.f32.mxu1 %vm52_vm0, %v5761_v7 }
 0x295   :  { %v5891_v36 = vpop.f32.mrb[8].mxu0 }
 0x296   :  { %v5893_v37 = vpop.f32.mrb[9].mxu0  ;;  %v686_v63 = vmul.f32 2.0, %v5891_v36 }
 0x299   :  { %v5895_v38 = vpop.f32.mrb[4].mxu1  ;;  %v5897_v39 = vpop.f32.mrb[10].mxu0 }
 0x29a   :  { %v5899_v40 = vpop.f32.mrb[5].mxu1  ;;  %v5901_v41 = vpop.f32.mrb[11].mxu0 }
 0x29b   :  { %v5374_v42 = vpack.c.bf16 %v5897_v39, %v5901_v41 }
 0x29d   :  { %v5905_v43 = vpop.f32.mrb[6].mxu1  ;;  %5375 = vmatprep.subr.bf16.mxu0 %v5374_v42 }
 0x29e   :  { %v5907_v44 = vpop.f32.mrb[7].mxu1  ;;  %5377 = vmatpush3.bf16.msra.mxu0 %v5374_v42 }
 0x29f   :  { %v5378_v45 = vpack.c.bf16 %v5905_v43, %v5907_v44  ;;  %5383 = vmatprep.subr.bf16.mxu0 %v5366_v29 }
 0x2a1   :  { %4977 = vmatmul.mubr.msk.f32.vlgmr.msra.gmra.mrb[12].mxu0 %vm52_vm0, %v5768_v8  ;;  %5379 = vmatprep.subr.bf16.mxu1 %v5378_v45 }
 0x2a2   :  { %5381 = vmatpush3.bf16.msra.mxu1 %v5378_v45  ;;  %5385 = vmatpush3.bf16.msra.mxu0 %v5366_v29  ;;  %v4479_v29 = vld [vmem:[%s6517_s4 + $0x2] sm:$0x3]  ;;  %v4496_v45 = vld [vmem:[%s6518_s5 + $0x50] sm:$0xff] }
 0x2a3   :  { %4990 = vmatprep.mubr.msk.f32.mxu0 %vm52_vm0, %v5798_v16  ;;  %5387 = vmatprep.subr.bf16.mxu1 %v5370_v35 }
 0x2a5   :  { %4984 = vmatmul.mubr.msk.f32.vlgmr.msra.gmra.mrb[8].mxu1 %vm52_vm0, %v5777_v9  ;;  %4991 = vmatmul.mubr.msk.f32.vlgmr.msra.gmra.mrb[14].mxu0 %vm52_vm0, %v5805_v17 }
 0x2a6   :  { %5389 = vmatpush3.bf16.msra.mxu1 %v5370_v35  ;;  %4997 = vmatprep.mubr.msk.f32.mxu1 %vm52_vm0, %v5812_v18  ;;  %v4495_v35 = vld [vmem:[%s6518_s5 + $0x48] sm:$0xff] }
 0x2a7   :  { %5004 = vmatprep.mubr.msk.f32.mxu0 %vm52_vm0, %v5798_v16  ;;  %v5414_v42 = vpack.c.bf16 %v4495_v35, %v4494_v34  ;;  %v4524_v35 = vld [vmem:[%s6518_s5 + $0x90] sm:$0xff] }
 0x2a9   :  { %4998 = vmatmul.mubr.msk.f32.vlgmr.msra.gmra.mrb[10].mxu1 %vm52_vm0, %v5823_v19 }
 0x2aa   :  { %5011 = vmatprep.mubr.msk.f32.mxu1 %vm52_vm0, %v5812_v18 }
 0x374   :  { %v5927_v46 = vpop.f32.mrb[12].mxu0 }
 0x375   :  { %v5929_v47 = vpop.f32.mrb[13].mxu0  ;;  %v994_v48 = vmul.f32 2.0, %v5927_v46 }
 0x377   :  { %v998_v46 = vsub.f32 %v994_v48, %v5843_v23 }
 0x378   :  { %v5937_v50 = vpop.f32.mrb[8].mxu1  ;;  %v5939_v51 = vpop.f32.mrb[14].mxu0 }
 0x379   :  { %v5941_v52 = vpop.f32.mrb[9].mxu1  ;;  %v5943_v53 = vpop.f32.mrb[15].mxu0 }
 0x37a   :  { %v5390_v54 = vpack.c.bf16 %v5939_v51, %v5943_v53 }
 0x37c   :  { %v5953_v58 = vpop.f32.mrb[10].mxu1  ;;  %5391 = vmatprep.subr.bf16.mxu0 %v5390_v54 }
 0x37d   :  { %v5955_v59 = vpop.f32.mrb[11].mxu1  ;;  %5393 = vmatpush3.bf16.msra.mxu0 %v5390_v54  ;;  %v4493_v54 = vld [vmem:[%s6517_s4 + $0x4] sm:$0x3] }
 0x37e   :  { %v5394_v60 = vpack.c.bf16 %v5953_v58, %v5955_v59  ;;  %5399 = vmatprep.subr.bf16.mxu0 %v5398_v55 }
 0x380   :  { %5005 = vmatmul.mubr.msk.f32.vlgmr.msra.gmra.mrb[16].mxu0 %vm52_vm0, %v5805_v17  ;;  %5395 = vmatprep.subr.bf16.mxu1 %v5394_v60 }
 0x381   :  { %5397 = vmatpush3.bf16.msra.mxu1 %v5394_v60  ;;  %5401 = vmatpush3.bf16.msra.mxu0 %v5398_v55  ;;  %v4509_v55 = vld [vmem:[%s6518_s5 + $0x68] sm:$0xff] }
 0x382   :  { %5403 = vmatprep.subr.bf16.mxu0 %v5402_v61  ;;  %5022 = vmatprep.mubr.msk.f32.mxu0 %vm1314_vm1, %v5838_v22 }
 0x384   :  { %5012 = vmatmul.mubr.msk.f32.vlgmr.msra.gmra.mrb[12].mxu1 %vm52_vm0, %v5823_v19 }
 0x385   :  { %5405 = vmatpush3.bf16.msra.mxu0 %v5402_v61  ;;  %5150 = vmatprep.mubr.msk.f32.mxu1 %vm52_vm0, %v5740_v2  ;;  %v366_v61 = vmul.f32 2.0, %v5831_v20 }
 0x386   :  { %5028 = vmatprep.subr.msk.mxu0 %vm1425_vm2, %v1309_v62 }
 0x387   :  { %v6069_v20 = vsub.f32 %v366_v61, %v5735_v1 }
 0x388   :  { %5023 = vmatmul.mubr.msk.f32.vlgmr.msra.gmra.mrb[18].mxu0 %vm1314_vm1, %v5843_v23 }
 0x389   :  { %5025 = vmatprep.mubr.msk.f32.mxu0 %vm1314_vm1, %v5860_v30  ;;  %5029 = vmatpush3.msk.msra.mxu0 %vm1425_vm2, %v1309_v62 }
 0x38a   :  { %5407 = vmatprep.subr.bf16.mxu0 %v5406_v6 }
 0x38c   :  { %5026 = vmatmul.mubr.msk.f32.gmra.mrb[20].mxu0 %vm1314_vm1, %v5865_v31 }
 0x38d   :  { %5030 = vmatprep.mubr.msk.f32.mxu0 %vm1412_vm3, %v5730_v0 }
 0x390   :  { %5031 = vmatmul.mubr.msk.f32.vlgmr.msra.gmra.mrb[18].mxu0 %vm1412_vm3, %v5735_v1 }
 0x391   :  { %5409 = vmatpush3.bf16.msra.mxu0 %v5406_v6  ;;  %5033 = vmatprep.mubr.msk.f32.mxu0 %vm1412_vm3, %v5749_v4  ;;  %v368_v6 = vmul.f32 2.0, %v5845_v24  ;;  %v4522_v24 = vld [vmem:[%s6518_s5 + $0x80] sm:$0xff] }
 0x392   :  { %5411 = vmatprep.subr.bf16.mxu0 %v5410_v28 }
 0x393   :  { %v6080_v15 = vsub.f32 %v368_v6, %v5754_v5  ;;  %v687_v6 = vmul.f32 2.0, %v5899_v40 }
 0x394   :  { %5034 = vmatmul.mubr.msk.f32.gmra.mrb[20].mxu0 %vm1412_vm3, %v5754_v5 }
 0x395   :  { %5413 = vmatpush3.bf16.msra.mxu0 %v5410_v28  ;;  %5044 = vmatprep.mubr.msk.f32.mxu0 %vm1314_vm1, %v5901_v41  ;;  %v4497_v41 = vld [vmem:[%s6518_s5 + $0x58] sm:$0xff]  ;;  %v4507_v28 = vld [vmem:[%s6517_s4 + $0x6] sm:$0x3]  ;;  %v6184_v36 = vsub.f32 %v687_v6, %v5749_v4 }
 0x396   :  { %5050 = vmatprep.subr.msk.mxu0 %vm1425_vm2, %v4479_v29 }
 0x398   :  { %5045 = vmatmul.mubr.msk.f32.vlgmr.msra.gmra.mrb[18].mxu0 %vm1314_vm1, %v5897_v39  ;;  %v5418_v39 = vpack.c.bf16 %v4497_v41, %v4496_v45  ;;  %v4521_v41 = vld [vmem:[%s6517_s4 + $0x8] sm:$0x3] }
 0x399   :  { %5047 = vmatprep.mubr.msk.f32.mxu0 %vm1314_vm1, %v5907_v44  ;;  %5051 = vmatpush3.msk.msra.mxu0 %vm1425_vm2, %v4479_v29  ;;  %v993_v44 = vmul.f32 2.0, %v5929_v47  ;;  %v4508_v47 = vld [vmem:[%s6518_s5 + $0x60] sm:$0xff]  ;;  %v4523_v29 = vld [vmem:[%s6518_s5 + $0x88] sm:$0xff] }
 0x39a   :  { %5415 = vmatprep.subr.bf16.mxu0 %v5414_v42  ;;  %v5422_v56 = vpack.c.bf16 %v4509_v55, %v4508_v47  ;;  %v5430_v34 = vpack.c.bf16 %v4523_v29, %v4522_v24  ;;  %v3188_v29 = vld [vmem:[%s6521_s8 + $0x10] sm:$0xff] }
 0x39b   :  { %v997_v49 = vsub.f32 %v993_v44, %v5838_v22  ;;  %v4537_v44 = vld [vmem:[%s6518_s5 + $0xa8] sm:$0xff] }
 0x39c   :  { %5048 = vmatmul.mubr.msk.f32.gmra.mrb[20].mxu0 %vm1314_vm1, %v5905_v43  ;;  %v995_v43 = vmul.f32 2.0, %v5941_v52  ;;  %v996_v52 = vmul.f32 2.0, %v5937_v50  ;;  %v6056_v50 = vsub.f32 %v365_v57, %v5730_v0 }
 0x39d   :  { %5052 = vmatprep.mubr.msk.f32.mxu0 %vm1412_vm3, %v5785_v11 }
 0x39e   :  { %v999_v60 = vsub.f32 %v995_v43, %v5860_v30  ;;  %v1000_v62 = vsub.f32 %v996_v52, %v5865_v31 }
 0x3a0   :  { %5053 = vmatmul.mubr.msk.f32.vlgmr.msra.gmra.mrb[18].mxu0 %vm1412_vm3, %v5783_v10 }
 0x3a1   :  { %5055 = vmatprep.mubr.msk.f32.mxu0 %vm1412_vm3, %v5791_v14  ;;  %5417 = vmatpush3.bf16.msra.mxu0 %v5414_v42  ;;  %v4525_v42 = vld [vmem:[%s6518_s5 + $0x98] sm:$0xff] }
 0x3a2   :  { %5419 = vmatprep.subr.bf16.mxu0 %v5418_v39  ;;  %v5434_v45 = vpack.c.bf16 %v4525_v42, %v4524_v35  ;;  %v4549_v42 = vld [vmem:[%s6519_s6] ss:$0 sm:$0xff] }
 0x3a4   :  { %5056 = vmatmul.mubr.msk.f32.gmra.mrb[20].mxu0 %vm1412_vm3, %v5789_v13 }
 0x3a5   :  { %5421 = vmatpush3.bf16.msra.mxu0 %v5418_v39  ;;  %5066 = vmatprep.mubr.msk.f32.mxu0 %vm1314_vm1, %v997_v49  ;;  %v4536_v39 = vld [vmem:[%s6518_s5 + $0xa0] sm:$0xff] }
 0x3a6   :  { %5072 = vmatprep.subr.msk.mxu0 %vm1425_vm2, %v4493_v54  ;;  %v5438_v48 = vpack.c.bf16 %v4537_v44, %v4536_v39 }
 0x3a8   :  { %5067 = vmatmul.mubr.msk.f32.vlgmr.msra.gmra.mrb[18].mxu0 %vm1314_vm1, %v998_v46 }
 0x3a9   :  { %5069 = vmatprep.mubr.msk.f32.mxu0 %vm1314_vm1, %v999_v60  ;;  %5073 = vmatpush3.msk.msra.mxu0 %vm1425_vm2, %v4493_v54  ;;  %v685_v60 = vmul.f32 2.0, %v5893_v37  ;;  %v6180_v37 = vsub.f32 %v686_v63, %v5735_v1 }
 0x3aa   :  { %5423 = vmatprep.subr.bf16.mxu0 %v5422_v56 }
 0x3ab   :  { %v6172_v3 = vsub.f32 %v685_v60, %v5730_v0 }
 0x3ac   :  { %5070 = vmatmul.mubr.msk.f32.gmra.mrb[20].mxu0 %vm1314_vm1, %v1000_v62 }
 0x3ad   :  { %5074 = vmatprep.mubr.msk.f32.mxu0 %vm1412_vm3, %v6056_v50 }
 0x3b0   :  { %5075 = vmatmul.mubr.msk.f32.vlgmr.msra.gmra.mrb[18].mxu0 %vm1412_vm3, %v6069_v20 }
 0x3b1   :  { %5077 = vmatprep.mubr.msk.f32.mxu0 %vm1412_vm3, %v6073_v26  ;;  %5425 = vmatpush3.bf16.msra.mxu0 %v5422_v56 }
 0x3b2   :  { %5427 = vmatprep.subr.bf16.mxu0 %v5426_v12 }
 0x3b4   :  { %5078 = vmatmul.mubr.msk.f32.gmra.mrb[20].mxu0 %vm1412_vm3, %v6080_v15 }
 0x3b5   :  { %5429 = vmatpush3.bf16.msra.mxu0 %v5426_v12  ;;  %5088 = vmatprep.mubr.msk.f32.mxu0 %vm1314_vm1, %v5838_v22  ;;  %v688_v12 = vmul.f32 2.0, %v5895_v38  ;;  %v3187_v38 = vld [vmem:[%s6521_s8 + $0x8] sm:$0xff] }
 0x3b6   :  { %5094 = vmatprep.subr.msk.mxu0 %vm1425_vm2, %v4507_v28 }
 0x3b7   :  { %v6191_v40 = vsub.f32 %v688_v12, %v5754_v5 }
 0x3b8   :  { %5089 = vmatmul.mubr.msk.f32.vlgmr.msra.gmra.mrb[18].mxu0 %vm1314_vm1, %v5843_v23 }
 0x3b9   :  { %5091 = vmatprep.mubr.msk.f32.mxu0 %vm1314_vm1, %v5860_v30  ;;  %5095 = vmatpush3.msk.msra.mxu0 %vm1425_vm2, %v4507_v28  ;;  %v3186_v28 = vld [vmem:[%s6521_s8] sm:$0xff] }
 0x3ba   :  { %5431 = vmatprep.subr.bf16.mxu0 %v5430_v34  ;;  %v5478_v24 = vpack.c.bf16 %v3187_v38, %v3186_v28 }
 0x3bc   :  { %5092 = vmatmul.mubr.msk.f32.gmra.mrb[20].mxu0 %vm1314_vm1, %v5865_v31 }
 0x3bd   :  { %5096 = vmatprep.mubr.msk.f32.mxu0 %vm1412_vm3, %v5730_v0 }
 0x3c0   :  { %5097 = vmatmul.mubr.msk.f32.vlgmr.msra.gmra.mrb[18].mxu0 %vm1412_vm3, %v5735_v1 }
 0x3c1   :  { %5433 = vmatpush3.bf16.msra.mxu0 %v5430_v34  ;;  %5099 = vmatprep.mubr.msk.f32.mxu0 %vm1412_vm3, %v5749_v4  ;;  %v3189_v34 = vld [vmem:[%s6521_s8 + $0x18] sm:$0xff] }
 0x3c2   :  { %5435 = vmatprep.subr.bf16.mxu0 %v5434_v45  ;;  %v5482_v35 = vpack.c.bf16 %v3189_v34, %v3188_v29 }
 0x3c4   :  { %5100 = vmatmul.mubr.msk.f32.gmra.mrb[20].mxu0 %vm1412_vm3, %v5754_v5 }
 0x3c5   :  { %5437 = vmatpush3.bf16.msra.mxu0 %v5434_v45  ;;  %5110 = vmatprep.mubr.msk.f32.mxu0 %vm1314_vm1, %v5943_v53  ;;  %v4539_v53 = vld [vmem:[%s6518_s5 + $0xb8] sm:$0xff] }
 0x3c6   :  { %5116 = vmatprep.subr.msk.mxu0 %vm1425_vm2, %v4521_v41 }
 0x3c8   :  { %5111 = vmatmul.mubr.msk.f32.vlgmr.msra.gmra.mrb[18].mxu0 %vm1314_vm1, %v5939_v51  ;;  %v4538_v51 = vld [vmem:[%s6518_s5 + $0xb0] sm:$0xff] }
 0x3c9   :  { %5113 = vmatprep.mubr.msk.f32.mxu0 %vm1314_vm1, %v5955_v59  ;;  %5117 = vmatpush3.msk.msra.mxu0 %vm1425_vm2, %v4521_v41  ;;  %v4535_v59 = vld [vmem:[%s6517_s4 + $0xa] sm:$0x3] }
 0x3ca   :  { %5439 = vmatprep.subr.bf16.mxu0 %v5438_v48 }
 0x3cc   :  { %5114 = vmatmul.mubr.msk.f32.gmra.mrb[20].mxu0 %vm1314_vm1, %v5953_v58  ;;  %v5442_v58 = vpack.c.bf16 %v4539_v53, %v4538_v51 }
 0x3cd   :  { %5118 = vmatprep.mubr.msk.f32.mxu0 %vm1412_vm3, %v5851_v27 }
 0x3d0   :  { %5119 = vmatmul.mubr.msk.f32.vlgmr.msra.gmra.mrb[18].mxu0 %vm1412_vm3, %v5847_v25 }
 0x3d1   :  { %5121 = vmatprep.mubr.msk.f32.mxu0 %vm1412_vm3, %v5869_v33  ;;  %5441 = vmatpush3.bf16.msra.mxu0 %v5438_v48 }
 0x3d2   :  { %5443 = vmatprep.subr.bf16.mxu0 %v5442_v58 }
 0x3d4   :  { %5122 = vmatmul.mubr.msk.f32.gmra.mrb[20].mxu0 %vm1412_vm3, %v5867_v32 }
 0x3d5   :  { %5445 = vmatpush3.bf16.msra.mxu0 %v5442_v58 }
 0x3d6   :  { %5138 = vmatprep.subr.msk.mxu0 %vm1425_vm2, %v4535_v59 }
 0x453   :  { %v5006_v49 = vpop.f32.mrb[16].mxu0 }
 0x454   :  { %v1302_v43 = vmul.f32 2.0, %v5006_v49  ;;  %v1217_v54 = vpop.f32.mrb[17].mxu0 }
 0x455   :  { %v1301_v47 = vmul.f32 2.0, %v1217_v54 }
 0x456   :  { %v1306_v52 = vsub.f32 %v1302_v43, %v5843_v23 }
 0x457   :  { %v1305_v55 = vsub.f32 %v1301_v47, %v5838_v22  ;;  %v5013_v46 = vpop.f32.mrb[12].mxu1 }
 0x458   :  { %v1304_v56 = vmul.f32 2.0, %v5013_v46  ;;  %v1292_v57 = vpop.f32.mrb[13].mxu1 }
 0x459   :  { %v1303_v61 = vmul.f32 2.0, %v1292_v57  ;;  %5132 = vmatprep.mubr.msk.f32.mxu0 %vm1314_vm1, %v1305_v55 }
 0x45a   :  { %5133 = vmatmul.mubr.msk.f32.vlgmr.msra.gmra.mrb[18].mxu0 %vm1314_vm1, %v1306_v52  ;;  %v1308_v21 = vsub.f32 %v1304_v56, %v5865_v31 }
 0x45b   :  { %v1307_v62 = vsub.f32 %v1303_v61, %v5860_v30  ;;  %5139 = vmatpush3.msk.msra.mxu0 %vm1425_vm2, %v4535_v59 }
 0x45c   :  { %5479 = vmatprep.subr.bf16.mxu0 %v5478_v24 }
 0x45d   :  { %5135 = vmatprep.mubr.msk.f32.mxu0 %vm1314_vm1, %v1307_v62 }
 0x45e   :  { %5136 = vmatmul.mubr.msk.f32.gmra.mrb[20].mxu0 %vm1314_vm1, %v1308_v21 }
 0x45f   :  { %5140 = vmatprep.mubr.msk.f32.mxu0 %vm1412_vm3, %v6172_v3 }
 0x462   :  { %5141 = vmatmul.mubr.msk.f32.vlgmr.msra.gmra.mrb[18].mxu0 %vm1412_vm3, %v6180_v37 }
 0x463   :  { %5143 = vmatprep.mubr.msk.f32.mxu0 %vm1412_vm3, %v6184_v36  ;;  %5481 = vmatpush3.bf16.msra.mxu0 %v5478_v24 }
 0x464   :  { %5483 = vmatprep.subr.bf16.mxu0 %v5482_v35 }
 0x466   :  { %5144 = vmatmul.mubr.msk.f32.gmra.mrb[20].mxu0 %vm1412_vm3, %v6191_v40 }
 0x467   :  { %5485 = vmatpush3.bf16.msra.mxu0 %v5482_v35 }
 0x535   :  { %v5142_v45 = vpop.f32.mrb[18].mxu0 }
 0x536   :  { %v2538_v41 = vadd.f32 %v5142_v45, %v4549_v42  ;;  %v2507_v39 = vpop.f32.mrb[19].mxu0 }
 0x537   :  { %v2537_v44 = vadd.f32 %v4549_v42, %v2507_v39 }
 0x538   :  { %v4551_v48 = vmul.f32 -1.442695, %v2538_v41 }
 0x539   :  { %v4550_v51 = vmul.f32 -1.442695, %v2537_v44  ;;  %v5145_v53 = vpop.f32.mrb[20].mxu0 }
 0x53a   :  { %5619 = vpow2.f32 %v4551_v48  ;;  %v2540_v58 = vadd.f32 %v5145_v53, %v4549_v42  ;;  %v2517_v59 = vpop.f32.mrb[21].mxu0 }
 0x53b   :  { %5621 = vpow2.f32 %v4550_v51  ;;  %v2539_v49 = vadd.f32 %v4549_v42, %v2517_v59 }
 0x53c   :  { %v4553_v43 = vmul.f32 -1.442695, %v2540_v58 }
 0x53d   :  { %v4552_v54 = vmul.f32 -1.442695, %v2539_v49  ;;  %v3185_v49 = vld [vmem:[%s6520_s7] sm:$0x3] }
 0x53e   :  { %5623 = vpow2.f32 %v4553_v43  ;;  %v4580_v43 = vld [vmem:[%s6521_s8 + $0x20] sm:$0xff] }
 0x53f   :  { %5625 = vpow2.f32 %v4552_v54  ;;  %v4581_v54 = vld [vmem:[%s6521_s8 + $0x28] sm:$0xff] }
 0x544   :  { %v5620_v47 = vpop.eup %5619 }
 0x545   :  { %v5622_v55 = vpop.eup %5621  ;;  %v2554_v46 = vadd.f32 1.0, %v5620_v47  ;;  %v5486_v47 = vpack.c.bf16 %v4581_v54, %v4580_v43  ;;  %v4636_v43 = vld [vmem:[%s6521_s8 + $0xa0] sm:$0xff] }
 0x546   :  { %v2553_v52 = vadd.f32 1.0, %v5622_v55  ;;  %v4582_v55 = vld [vmem:[%s6521_s8 + $0x30] sm:$0xff] }
 0x547   :  { %5627 = vrcp.f32 %v2554_v46  ;;  %v4583_v46 = vld [vmem:[%s6521_s8 + $0x38] sm:$0xff] }
 0x548   :  { %v5624_v56 = vpop.eup %5623  ;;  %5629 = vrcp.f32 %v2553_v52  ;;  %v4595_v52 = vld [vmem:[%s6521_s8 + $0x48] sm:$0xff] }
 0x549   :  { %v5626_v57 = vpop.eup %5625  ;;  %v2556_v60 = vadd.f32 1.0, %v5624_v56 }
 0x54a   :  { %v2555_v61 = vadd.f32 1.0, %v5626_v57  ;;  %v4596_v57 = vld [vmem:[%s6521_s8 + $0x50] sm:$0xff] }
 0x54b   :  { %5631 = vrcp.f32 %v2556_v60  ;;  %v4597_v60 = vld [vmem:[%s6521_s8 + $0x58] sm:$0xff] }
 0x54c   :  { %5633 = vrcp.f32 %v2555_v61  ;;  %v5498_v61 = vpack.c.bf16 %v4597_v60, %v4596_v57 }
 0x551   :  { %v6210_v62 = vpop.eup %5627 }
 0x552   :  { %v6212_v63 = vpop.eup %5629  ;;  %v6216_v21 = vmul.f32 %v6210_v62, %v5843_v23 }
 0x553   :  { %v6220_v6 = vmul.f32 %v6212_v63, %v5838_v22 }
 0x555   :  { %v6222_v12 = vpop.eup %5631  ;;  %5210 = vmatprep.mubr.msk.f32.mxu0 %vm1314_vm1, %v6220_v6  ;;  %v5446_v28 = vpack.c.bf16 %v6216_v21, %v6220_v6 }
 0x556   :  { %v6228_v38 = vpop.eup %5633  ;;  %5211 = vmatmul.mubr.msk.f32.vlgmr.msra.gmra.mrb[22].mxu0 %vm1314_vm1, %v6216_v21  ;;  %v6234_v23 = vmul.f32 %v6222_v12, %v5865_v31 }
 0x557   :  { %5447 = vmatprep.subr.bf16.mxu1 %v5446_v28  ;;  %v6238_v22 = vmul.f32 %v6228_v38, %v5860_v30 }
 0x558   :  { %5449 = vmatpush3.bf16.msra.mxu1 %v5446_v28 }
 0x559   :  { %5213 = vmatprep.mubr.msk.f32.mxu0 %vm1314_vm1, %v6238_v22  ;;  %v5450_v24 = vpack.c.bf16 %v6234_v23, %v6238_v22 }
 0x55a   :  { %5214 = vmatmul.mubr.msk.f32.gmra.mrb[24].mxu0 %vm1314_vm1, %v6234_v23 }
 0x55b   :  { %5151 = vmatmul.mubr.msk.f32.vlgmr.msra.gmra.mrb[14].mxu1 %vm52_vm0, %v5768_v8  ;;  %5451 = vmatprep.subr.bf16.mxu1 %v5450_v24 }
 0x55c   :  { %5453 = vmatpush3.bf16.msra.mxu1 %v5450_v24  ;;  %5157 = vmatprep.mubr.msk.f32.mxu1 %vm52_vm0, %v5761_v7 }
 0x55f   :  { %5158 = vmatmul.mubr.msk.f32.vlgmr.msra.gmra.mrb[16].mxu1 %vm52_vm0, %v5777_v9 }
 0x560   :  { %5164 = vmatprep.mubr.msk.f32.mxu1 %vm52_vm0, %v5740_v2 }
 0x629   :  { %v6254_v30 = vpop.f32.mrb[22].mxu0 }
 0x62a   :  { %v6256_v31 = vpop.f32.mrb[23].mxu0 }
 0x62d   :  { %v6258_v29 = vpop.f32.mrb[24].mxu0 }
 0x62e   :  { %v6260_v34 = vpop.f32.mrb[14].mxu1  ;;  %v6262_v35 = vpop.f32.mrb[25].mxu0 }
 0x62f   :  { %v2635_v42 = vpop.f32.mrb[15].mxu1 }
 0x630   :  { %v5454_v45 = vpack.c.bf16 %v6260_v34, %v2635_v42 }
 0x632   :  { %v6265_v41 = vpop.f32.mrb[16].mxu1  ;;  %5455 = vmatprep.subr.bf16.mxu1 %v5454_v45 }
 0x633   :  { %v2710_v39 = vpop.f32.mrb[17].mxu1  ;;  %5457 = vmatpush3.bf16.msra.mxu1 %v5454_v45  ;;  %v4593_v45 = vld [vmem:[%s6520_s7 + $0x4] sm:$0x3] }
 0x634   :  { %v5458_v2 = vpack.c.bf16 %v6265_v41, %v2710_v39 }
 0x636   :  { %5165 = vmatmul.mubr.msk.f32.vlgmr.msra.gmra.mrb[18].mxu1 %vm52_vm0, %v5768_v8  ;;  %5459 = vmatprep.subr.bf16.mxu1 %v5458_v2 }
 0x637   :  { %5461 = vmatpush3.bf16.msra.mxu1 %v5458_v2  ;;  %5171 = vmatprep.mubr.msk.f32.mxu1 %vm52_vm0, %v5761_v7 }
 0x638   :  { %5463 = vmatprep.subr.bf16.mxu1 %v5446_v28 }
 0x63a   :  { %5172 = vmatmul.mubr.msk.f32.vlgmr.msra.gmra.mrb[20].mxu1 %vm52_vm0, %v5777_v9 }
 0x63b   :  { %5465 = vmatpush3.bf16.msra.mxu1 %v5446_v28  ;;  %5178 = vmatprep.mubr.msk.f32.mxu1 %vm52_vm0, %v5798_v16 }
 0x63c   :  { %5467 = vmatprep.subr.bf16.mxu1 %v5450_v24 }
 0x63e   :  { %5179 = vmatmul.mubr.msk.f32.vlgmr.msra.gmra.mrb[22].mxu1 %vm52_vm0, %v5805_v17 }
 0x63f   :  { %5469 = vmatpush3.bf16.msra.mxu1 %v5450_v24  ;;  %5185 = vmatprep.mubr.msk.f32.mxu1 %vm52_vm0, %v5812_v18 }
 0x642   :  { %5186 = vmatmul.mubr.msk.f32.vlgmr.msra.gmra.mrb[24].mxu1 %vm52_vm0, %v5823_v19 }
 0x643   :  { %5192 = vmatprep.mubr.msk.f32.mxu1 %vm52_vm0, %v5798_v16 }
 0x709   :  { %v5166_v7 = vpop.f32.mrb[18].mxu1 }
 0x70a   :  { %v2785_v8 = vpop.f32.mrb[19].mxu1  ;;  %v2870_v24 = vmul.f32 2.0, %v5166_v7 }
 0x70b   :  { %v2869_v28 = vmul.f32 2.0, %v2785_v8  ;;  %v4611_v8 = vld [vmem:[%s6521_s8 + $0x78] sm:$0xff] }
 0x70d   :  { %v5173_v9 = vpop.f32.mrb[20].mxu1 }
 0x70e   :  { %v2860_v44 = vpop.f32.mrb[21].mxu1 }
 0x711   :  { %v6284_v48 = vpop.f32.mrb[22].mxu1 }
 0x712   :  { %v6286_v51 = vpop.f32.mrb[23].mxu1 }
 0x713   :  { %v5470_v53 = vpack.c.bf16 %v6284_v48, %v6286_v51 }
 0x715   :  { %v6290_v58 = vpop.f32.mrb[24].mxu1  ;;  %5471 = vmatprep.subr.bf16.mxu1 %v5470_v53 }
 0x716   :  { %v6292_v59 = vpop.f32.mrb[25].mxu1  ;;  %5473 = vmatpush3.bf16.msra.mxu1 %v5470_v53  ;;  %v4622_v53 = vld [vmem:[%s6521_s8 + $0x80] sm:$0xff] }
 0x717   :  { %v5474_v16 = vpack.c.bf16 %v6290_v58, %v6292_v59 }
 0x719   :  { %5193 = vmatmul.mubr.msk.f32.vlgmr.msra.gmra.mrb[26].mxu1 %vm52_vm0, %v5805_v17  ;;  %5475 = vmatprep.subr.bf16.mxu1 %v5474_v16  ;;  %v5490_v17 = vpack.c.bf16 %v4583_v46, %v4582_v55 }
 0x71a   :  { %5477 = vmatpush3.bf16.msra.mxu1 %v5474_v16  ;;  %5199 = vmatprep.mubr.msk.f32.mxu1 %vm52_vm0, %v5812_v18  ;;  %v4579_v18 = vld [vmem:[%s6520_s7 + $0x2] sm:$0x3] }
 0x71b   :  { %5216 = vmatprep.subr.msk.mxu1 %vm1425_vm2, %v3185_v49 }
 0x71d   :  { %5200 = vmatmul.mubr.msk.f32.vlgmr.msra.gmra.mrb[28].mxu1 %vm52_vm0, %v5823_v19  ;;  %v4594_v19 = vld [vmem:[%s6521_s8 + $0x40] sm:$0xff] }
 0x71e   :  { %5217 = vmatpush3.msk.msra.mxu1 %vm1425_vm2, %v3185_v49  ;;  %5218 = vmatprep.mubr.msk.f32.mxu1 %vm1412_vm3, %v5730_v0  ;;  %v5494_v56 = vpack.c.bf16 %v4595_v52, %v4594_v19  ;;  %v4621_v49 = vld [vmem:[%s6520_s7 + $0x8] sm:$0x3] }
 0x71f   :  { %5487 = vmatprep.subr.bf16.mxu1 %v5486_v47 }
 0x721   :  { %5219 = vmatmul.mubr.msk.f32.vlgmr.msra.gmra.mrb[30].mxu1 %vm1412_vm3, %v5735_v1 }
 0x722   :  { %5489 = vmatpush3.bf16.msra.mxu1 %v5486_v47  ;;  %5221 = vmatprep.mubr.msk.f32.mxu1 %vm1412_vm3, %v5749_v4 }
 0x723   :  { %5491 = vmatprep.subr.bf16.mxu1 %v5490_v17 }
 0x725   :  { %5222 = vmatmul.mubr.msk.f32.gmra.mrb[32].mxu1 %vm1412_vm3, %v5754_v5 }
 0x726   :  { %5493 = vmatpush3.bf16.msra.mxu1 %v5490_v17  ;;  %5232 = vmatprep.mubr.msk.f32.mxu1 %vm1314_vm1, %v2635_v42  ;;  %v2871_v42 = vmul.f32 2.0, %v2860_v44  ;;  %v4607_v44 = vld [vmem:[%s6520_s7 + $0x6] sm:$0x3] }
 0x727   :  { %5238 = vmatprep.subr.msk.mxu1 %vm1425_vm2, %v4579_v18 }
 0x728   :  { %v2875_v2 = vsub.f32 %v2871_v42, %v6238_v22  ;;  %v4375_v42 = vsub.f32 1.0, %v6210_v62 }
 0x729   :  { %5233 = vmatmul.mubr.msk.f32.vlgmr.msra.gmra.mrb[30].mxu1 %vm1314_vm1, %v6260_v34  ;;  %v2873_v34 = vsub.f32 %v2869_v28, %v6220_v6 }
 0x72a   :  { %5235 = vmatprep.mubr.msk.f32.mxu1 %vm1314_vm1, %v2710_v39  ;;  %5239 = vmatpush3.msk.msra.mxu1 %vm1425_vm2, %v4579_v18 }
 0x72b   :  { %5495 = vmatprep.subr.bf16.mxu1 %v5494_v56 }
 0x72d   :  { %5236 = vmatmul.mubr.msk.f32.gmra.mrb[32].mxu1 %vm1314_vm1, %v6265_v41  ;;  %v2872_v41 = vmul.f32 2.0, %v5173_v9 }
 0x72e   :  { %5240 = vmatprep.mubr.msk.f32.mxu1 %vm1412_vm3, %v5785_v11  ;;  %v4608_v11 = vld [vmem:[%s6521_s8 + $0x60] sm:$0xff] }
 0x72f   :  { %v2876_v7 = vsub.f32 %v2872_v41, %v6234_v23 }
 0x731   :  { %5241 = vmatmul.mubr.msk.f32.vlgmr.msra.gmra.mrb[30].mxu1 %vm1412_vm3, %v5783_v10  ;;  %v4609_v10 = vld [vmem:[%s6521_s8 + $0x68] sm:$0xff] }
 0x732   :  { %5243 = vmatprep.mubr.msk.f32.mxu1 %vm1412_vm3, %v5791_v14  ;;  %5497 = vmatpush3.bf16.msra.mxu1 %v5494_v56  ;;  %v2874_v14 = vsub.f32 %v2870_v24, %v6216_v21  ;;  %v5502_v39 = vpack.c.bf16 %v4609_v10, %v4608_v11  ;;  %v4359_v24 = vpop.permute.xlu0 %4358  ;;  %v4374_v11 = vsub.f32 1.0, %v6212_v63 }
 0x733   :  { %5499 = vmatprep.subr.bf16.mxu1 %v5498_v61 }
 0x735   :  { %5244 = vmatmul.mubr.msk.f32.gmra.mrb[32].mxu1 %vm1412_vm3, %v5789_v13  ;;  %v4610_v13 = vld [vmem:[%s6521_s8 + $0x70] sm:$0xff] }
 0x736   :  { %5501 = vmatpush3.bf16.msra.mxu1 %v5498_v61  ;;  %5254 = vmatprep.mubr.msk.f32.mxu1 %vm1314_vm1, %v2873_v34  ;;  %v5506_v9 = vpack.c.bf16 %v4611_v8, %v4610_v13  ;;  %v4377_v13 = vsub.f32 1.0, %v6222_v12 }
 0x737   :  { %5260 = vmatprep.subr.msk.mxu1 %vm1425_vm2, %v4593_v45 }
 0x739   :  { %5255 = vmatmul.mubr.msk.f32.vlgmr.msra.gmra.mrb[30].mxu1 %vm1314_vm1, %v2874_v14 }
 0x73a   :  { %5257 = vmatprep.mubr.msk.f32.mxu1 %vm1314_vm1, %v2875_v2  ;;  %5261 = vmatpush3.msk.msra.mxu1 %vm1425_vm2, %v4593_v45 }
 0x73b   :  { %5503 = vmatprep.subr.bf16.mxu1 %v5502_v39 }
 0x73d   :  { %5258 = vmatmul.mubr.msk.f32.gmra.mrb[32].mxu1 %vm1314_vm1, %v2876_v7 }
 0x73e   :  { %5262 = vmatprep.mubr.msk.f32.mxu1 %vm1412_vm3, %v6056_v50  ;;  %v4623_v50 = vld [vmem:[%s6521_s8 + $0x88] sm:$0xff] }
 0x741   :  { %5263 = vmatmul.mubr.msk.f32.vlgmr.msra.gmra.mrb[30].mxu1 %vm1412_vm3, %v6069_v20  ;;  %v5510_v20 = vpack.c.bf16 %v4623_v50, %v4622_v53 }
 0x742   :  { %5265 = vmatprep.mubr.msk.f32.mxu1 %vm1412_vm3, %v6073_v26  ;;  %5505 = vmatpush3.bf16.msra.mxu1 %v5502_v39  ;;  %v4624_v26 = vld [vmem:[%s6521_s8 + $0x90] sm:$0xff]  ;;  %v4370_v39 = vmul.f32 %v6212_v63, %v4359_v24 }
 0x743   :  { %5507 = vmatprep.subr.bf16.mxu1 %v5506_v9 }
 0x745   :  { %5266 = vmatmul.mubr.msk.f32.gmra.mrb[32].mxu1 %vm1412_vm3, %v6080_v15  ;;  %v4625_v15 = vld [vmem:[%s6521_s8 + $0x98] sm:$0xff] }
 0x746   :  { %5509 = vmatpush3.bf16.msra.mxu1 %v5506_v9  ;;  %5276 = vmatprep.mubr.msk.f32.mxu1 %vm1314_vm1, %v6220_v6  ;;  %v5514_v16 = vpack.c.bf16 %v4625_v15, %v4624_v26 }
 0x747   :  { %5282 = vmatprep.subr.msk.mxu1 %vm1425_vm2, %v4607_v44 }
 0x749   :  { %5277 = vmatmul.mubr.msk.f32.vlgmr.msra.gmra.mrb[30].mxu1 %vm1314_vm1, %v6216_v21 }
 0x74a   :  { %5279 = vmatprep.mubr.msk.f32.mxu1 %vm1314_vm1, %v6238_v22  ;;  %5283 = vmatpush3.msk.msra.mxu1 %vm1425_vm2, %v4607_v44  ;;  %v4376_v44 = vsub.f32 1.0, %v6228_v38 }
 0x74b   :  { %5511 = vmatprep.subr.bf16.mxu1 %v5510_v20 }
 0x74d   :  { %5280 = vmatmul.mubr.msk.f32.gmra.mrb[32].mxu1 %vm1314_vm1, %v6234_v23 }
 0x74e   :  { %5284 = vmatprep.mubr.msk.f32.mxu1 %vm1412_vm3, %v5730_v0  ;;  %v4637_v0 = vld [vmem:[%s6521_s8 + $0xa8] sm:$0xff] }
 0x751   :  { %5285 = vmatmul.mubr.msk.f32.vlgmr.msra.gmra.mrb[30].mxu1 %vm1412_vm3, %v5735_v1  ;;  %v5518_v1 = vpack.c.bf16 %v4637_v0, %v4636_v43 }
 0x752   :  { %5513 = vmatpush3.bf16.msra.mxu1 %v5510_v20  ;;  %5287 = vmatprep.mubr.msk.f32.mxu1 %vm1412_vm3, %v5749_v4  ;;  %v4638_v4 = vld [vmem:[%s6521_s8 + $0xb0] sm:$0xff] }
 0x753   :  { %5515 = vmatprep.subr.bf16.mxu1 %v5514_v16 }
 0x755   :  { %5288 = vmatmul.mubr.msk.f32.gmra.mrb[32].mxu1 %vm1412_vm3, %v5754_v5  ;;  %v4639_v5 = vld [vmem:[%s6521_s8 + $0xb8] sm:$0xff] }
 0x756   :  { %5517 = vmatpush3.bf16.msra.mxu1 %v5514_v16  ;;  %5298 = vmatprep.mubr.msk.f32.mxu1 %vm1314_vm1, %v6286_v51 }
 0x757   :  { %5304 = vmatprep.subr.msk.mxu1 %vm1425_vm2, %v4621_v49 }
 0x759   :  { %5299 = vmatmul.mubr.msk.f32.vlgmr.msra.gmra.mrb[30].mxu1 %vm1314_vm1, %v6284_v48  ;;  %v5522_v48 = vpack.c.bf16 %v4639_v5, %v4638_v4 }
 0x75a   :  { %5301 = vmatprep.mubr.msk.f32.mxu1 %vm1314_vm1, %v6292_v59  ;;  %5305 = vmatpush3.msk.msra.mxu1 %vm1425_vm2, %v4621_v49 }
 0x75b   :  { %5519 = vmatprep.subr.bf16.mxu1 %v5518_v1 }
 0x75d   :  { %5302 = vmatmul.mubr.msk.f32.gmra.mrb[32].mxu1 %vm1314_vm1, %v6290_v58 }
 0x75e   :  { %5306 = vmatprep.mubr.msk.f32.mxu1 %vm1412_vm3, %v5851_v27 }
 0x761   :  { %5307 = vmatmul.mubr.msk.f32.vlgmr.msra.gmra.mrb[30].mxu1 %vm1412_vm3, %v5847_v25  ;;  %v4635_v25 = vld [vmem:[%s6520_s7 + $0xa] sm:$0x3] }
 0x762   :  { %5309 = vmatprep.mubr.msk.f32.mxu1 %vm1412_vm3, %v5869_v33  ;;  %5521 = vmatpush3.bf16.msra.mxu1 %v5518_v1 }
 0x763   :  { %5523 = vmatprep.subr.bf16.mxu1 %v5522_v48 }
 0x765   :  { %5310 = vmatmul.mubr.msk.f32.gmra.mrb[32].mxu1 %vm1412_vm3, %v5867_v32 }
 0x766   :  { %5525 = vmatpush3.bf16.msra.mxu1 %v5522_v48 }
 0x767   :  { %5326 = vmatprep.subr.msk.mxu1 %vm1425_vm2, %v4635_v25 }
 0x7ec   :  { %v5194_v27 = vpop.f32.mrb[26].mxu1 }
 0x7ed   :  { %v3178_v33 = vmul.f32 2.0, %v5194_v27  ;;  %v3093_v32 = vpop.f32.mrb[27].mxu1 }
 0x7ee   :  { %v3177_v51 = vmul.f32 2.0, %v3093_v32 }
 0x7ef   :  { %v3182_v54 = vsub.f32 %v3178_v33, %v6216_v21 }
 0x7f0   :  { %v3181_v58 = vsub.f32 %v3177_v51, %v6220_v6  ;;  %v5201_v59 = vpop.f32.mrb[28].mxu1  ;;  %v4649_v6 = vld [vmem:[%s6522_s9] ss:$0 sm:$0xff]  ;;  %s5668_s9 = smov 96  }
 0x7f1   :  { %v3180_v47 = vmul.f32 2.0, %v5201_v59  ;;  %v3168_v55 = vpop.f32.mrb[29].mxu1 }
 0x7f2   :  { %v3179_v46 = vmul.f32 2.0, %v3168_v55  ;;  %5320 = vmatprep.mubr.msk.f32.mxu1 %vm1314_vm1, %v3181_v58 }
 0x7f3   :  { %5321 = vmatmul.mubr.msk.f32.vlgmr.msra.gmra.mrb[30].mxu1 %vm1314_vm1, %v3182_v54  ;;  %v3184_v18 = vsub.f32 %v3180_v47, %v6234_v23 }
 0x7f4   :  { %v3183_v17 = vsub.f32 %v3179_v46, %v6238_v22  ;;  %5327 = vmatpush3.msk.msra.mxu1 %vm1425_vm2, %v4635_v25 }
 0x7f6   :  { %5323 = vmatprep.mubr.msk.f32.mxu1 %vm1314_vm1, %v3183_v17 }
 0x7f7   :  { %5324 = vmatmul.mubr.msk.f32.gmra.mrb[32].mxu1 %vm1314_vm1, %v3184_v18 }
 0x7f8   :  { %5328 = vmatprep.mubr.msk.f32.mxu1 %vm1412_vm3, %v6172_v3 }
 0x7fb   :  { %5329 = vmatmul.mubr.msk.f32.vlgmr.msra.gmra.mrb[30].mxu1 %vm1412_vm3, %v6180_v37 }
 0x7fc   :  { %5331 = vmatprep.mubr.msk.f32.mxu1 %vm1412_vm3, %v6184_v36 }
 0x7ff   :  { %5332 = vmatmul.mubr.msk.f32.gmra.mrb[32].mxu1 %vm1412_vm3, %v6191_v40 }
 0x8ce   :  { %v5330_v21 = vpop.f32.mrb[30].mxu1 }
 0x8cf   :  { %v5526_v23 = vadd.f32 %v5330_v21, %v6254_v30  ;;  %v4320_v22 = vpop.f32.mrb[31].mxu1 }
 0x8d0   :  { %v5527_v19 = vadd.f32 %v4320_v22, %v6256_v31 }
 0x8d1   :  { %v4351_v3 = vadd.f32 %v5526_v23, %v4649_v6 }
 0x8d2   :  { %v4350_v52 = vadd.f32 %v5527_v19, %v4649_v6  ;;  %v5333_v56 = vpop.f32.mrb[32].mxu1 }
 0x8d3   :  { %5635 = vtanh.f32 %v4351_v3  ;;  %v5528_v37 = vadd.f32 %v5333_v56, %v6258_v29  ;;  %v4330_v36 = vpop.f32.mrb[33].mxu1  ;;  %v4363_v29 = vpop.permute.xlu1 %4362 }
 0x8d4   :  { %5637 = vtanh.f32 %v4350_v52  ;;  %v5529_v40 = vadd.f32 %v4330_v36, %v6262_v35  ;;  %v4361_v35 = vpop.permute.xlu0 %4360 }
 0x8d5   :  { %v4353_v57 = vadd.f32 %v5528_v37, %v4649_v6  ;;  %v4371_v10 = vmul.f32 %v6210_v62, %v4361_v35  ;;  %v4372_v62 = vmul.f32 %v6228_v38, %v4363_v29 }
 0x8d6   :  { %v4352_v60 = vadd.f32 %v5529_v40, %v4649_v6 }
 0x8d7   :  { %5639 = vtanh.f32 %v4353_v57  ;;  %v4365_v34 = vpop.permute.xlu1 %4364 }
 0x8d8   :  { %5641 = vtanh.f32 %v4352_v60  ;;  %v4373_v53 = vmul.f32 %v6222_v12, %v4365_v34 }
 0x8dd   :  { %v5636_v61 = vpop.eup %5635 }
 0x8de   :  { %v5638_v28 = vpop.eup %5637  ;;  %4384 = vrot.lane.b32.xlu1 %v5636_v61, %s5667_s11 }
 0x8df   :  { %4382 = vrot.lane.b32.xlu0 %v5638_v28, %s5667_s11 }
 0x8e1   :  { %v5640_v30 = vpop.eup %5639 }
 0x8e2   :  { %v5642_v31 = vpop.eup %5641  ;;  %4388 = vrot.lane.b32.xlu1 %v5640_v30, %s5667_s11 }
 0x8e3   :  { %4386 = vrot.lane.b32.xlu0 %v5642_v31, %s5667_s11  ;;  %s5669_s11 = smov [#allocation2]  }
 0x8e4   :  { %s4427_s6 = sshll.u32 %s5669_s11, 4  ;;  %s4428_s6 = int_to_ptr.vmem [resolvable:$true] %s4427_s6 }
 0x8e5   :  { %s5643_s19 = scalar_lea.vmem %s4428_s6, 512  ;;  %p5648_p1 = scmp.lt.s32.totalorder %s4428_s6, %s4428_s6 }
 0x8e6   :  { %p5644_p0 = scmp.ne.s32.totalorder %s4428_s6, %s5643_s19  ;;  %p5649_p2 = scmp.lt.s32.totalorder %s5643_s19, %s5643_s19 }
 0x8e8   :  { %p5650_p3 = por %p5649_p2, %p5648_p1 }
 0x8ea   :  { %p5651_p4 = pnand %p5650_p3, %p5644_p0 }
 0x950   :  { %v4385_v45 = vpop.permute.xlu1 %4384 }
 0x951   :  { %v4395_v14 = vmul.f32 %v4385_v45, %v4375_v42  ;;  %v4383_v41 = vpop.permute.xlu0 %4382 }
 0x952   :  { %v4394_v2 = vmul.f32 %v4383_v41, %v4374_v11 }
 0x953   :  { %v4399_v7 = vadd.f32 %v4395_v14, %v4371_v10 }
 0x954   :  { %v4398_v8 = vadd.f32 %v4394_v2, %v4370_v39  ;;  %v4389_v9 = vpop.permute.xlu1 %4388 }
 0x955   :  { %v4397_v50 = vmul.f32 %v4389_v9, %v4377_v13  ;;  %4408 = vrot.lane.b32.xlu1 %v4399_v7, %s5668_s9  ;;  %v4387_v20 = vpop.permute.xlu0 %4386 }
 0x956   :  { %v4396_v26 = vmul.f32 %v4387_v20, %v4376_v44  ;;  %4406 = vrot.lane.b32.xlu0 %v4398_v8, %s5668_s9 }
 0x957   :  { %v4401_v15 = vadd.f32 %v4397_v50, %v4373_v53 }
 0x958   :  { %v4400_v63 = vadd.f32 %v4396_v26, %v4372_v62 }
 0x959   :  { %4412 = vrot.lane.b32.xlu1 %v4401_v15, %s5668_s9 }
 0x95a   :  { %4410 = vrot.lane.b32.xlu0 %v4400_v63, %s5668_s9 }
 0x9c7   :  { %v4409_v16 = vpop.permute.xlu1 %4408 }
 0x9c8   :  { %4419 = vst.msk [vmem:[#allocation2 + $0x8] sm:$0xff] %vm1314_vm1, %v4409_v16  ;;  %v4407_v49 = vpop.permute.xlu0 %4406 }
 0x9c9   :  { %4418 = vst.msk [vmem:[#allocation2] sm:$0xff] %vm1314_vm1, %v4407_v49 }
 0x9cb   :  { %v4413_v12 = vpop.permute.xlu1 %4412 }
 0x9cc   :  { %4421 = vst.msk [vmem:[#allocation2 + $0x18] sm:$0xff] %vm1314_vm1, %v4413_v12  ;;  %v4411_v43 = vpop.permute.xlu0 %4410 }
 0x9cd   :  { %4420 = vst.msk [vmem:[#allocation2 + $0x10] sm:$0xff] %vm1314_vm1, %v4411_v43 }
 0x9ce   :  { %5654 = shalt.err (!%p5651_p4)
}
 0x9cf   :  { %s5655_s1 = scalar_lea.hbm %s6523_s10, 512 }
 0x9d0   :  { %p5656_p5 = scmp.ne.s32.totalorder %s6523_s10, %s5655_s1  ;;  %p5659_p6 = scmp.lt.u32.totalorder %s5655_s1, %s6523_s10 }
 0x9d2   :  { %p5661_p7 = pnand %p5659_p6, %p5656_p5 }
 0x9d4   :  { %5664 = shalt.err (!%p5661_p7)
}
 0x9d5   :  { %s5670_s26 = smov 128   ;;  %s5671_s0 = smov 8  }
 0x9d6   :  { %4433 = dma.vmem_to_hbm [thread:$0]  %s4428_s6, 512, %s6523_s10, [#allocation3], %s5670_s26, %s5670_s26, %s5671_s0  }
 0x9d7   :  { %5665 = dma.done.wait [#allocation3], 512  }
 0x9d8   :  { %5666 = vsyncadd [#allocation3], 4294966784 }
 0x9d9   :  { %4437 = vsyncpa [#allocation3], 1 }

</bundles_post_ra>
